<compile_context>
chip_gen: v5e
topology: v5e:2x2
jax: 0.10.0
libtpu: 0.0.40
codegen_flags: <defaults>
</compile_context>

<pallas_src>
import jax
import jax.numpy as jnp
from jax import lax
from jax.experimental import pallas as pl
from jax.experimental.pallas import tpu as pltpu


def _make_bilstm_kernel(T, BP, E, H, compute_dtype, unroll):
    """Fused-direction BiLSTM kernel for static shapes.

    xproj / gate column layout (8H): [ (i,f,o,g)_fwd | (i,f,o,g)_bwd ]
    Output layout (2H):              [ h_fwd | h_bwd ]
    """
    H4 = 4 * H
    H8 = 8 * H
    f32 = jnp.float32

    def kernel(emb_ref, len_ref, wih_ref, whhf_ref, whhb_ref, b_ref,
               out_ref, xp_ref):
        # ---- hoisted loop invariants ----------------------------------------
        lengths = len_ref[...]                       # [BP, 1] int32
        whh_f = whhf_ref[...]                        # [H, 4H] compute_dtype
        whh_b = whhb_ref[...]                        # [H, 4H] compute_dtype

        # ---- input projection hoisted out of the recurrence: one big GEMM ---
        x2d = emb_ref[...].reshape(T * BP, E)
        xp = jnp.dot(x2d, wih_ref[...], preferred_element_type=f32) + b_ref[...]
        xp_ref[...] = xp.reshape(T, BP, H8).astype(compute_dtype)

        def cell(gates, c):
            # gates: [BP, 4H] in (i, f, o, g) order; sigmoid over contiguous 3H,
            # tanh only over the g gate (no wasted EUP work).
            sg = jax.nn.sigmoid(gates[:, 0:3 * H])
            i_g = sg[:, 0:H]
            f_g = sg[:, H:2 * H]
            o_g = sg[:, 2 * H:3 * H]
            g_g = jnp.tanh(gates[:, 3 * H:H4])
            c_new = f_g * c + i_g * g_g
            h_new = o_g * jnp.tanh(c_new)
            return h_new, c_new

        # ---- fused fwd/bwd recurrence ----------------------------------------
        # Iteration i handles t_f = i (forward) and t_b = T-1-i (backward); the
        # two independent chains hide each other's MXU/EUP latency.
        def body(i, carry):
            h_f, c_f, h_b, c_b = carry               # each [BP, H] f32
            t_f = i
            t_b = T - 1 - i

            # direction-blocked layout -> two contiguous 4H loads, no vselect
            gin_f = xp_ref[t_f, :, pl.ds(0, H4)]
            gin_b = xp_ref[t_b, :, pl.ds(H4, H4)]

            gates_f = gin_f.astype(f32) + jnp.dot(
                h_f.astype(compute_dtype), whh_f, preferred_element_type=f32)
            gates_b = gin_b.astype(f32) + jnp.dot(
                h_b.astype(compute_dtype), whh_b, preferred_element_type=f32)

            h_f_new, c_f_new = cell(gates_f, c_f)
            h_b_new, c_b_new = cell(gates_b, c_b)

            # packed-sequence masking: cheap [BP,1] compares broadcast over H
            valid_f = lengths > t_f
            valid_b = lengths > t_b

            h_f = jnp.where(valid_f, h_f_new, h_f)
            c_f = jnp.where(valid_f, c_f_new, c_f)
            h_b = jnp.where(valid_b, h_b_new, h_b)
            c_b = jnp.where(valid_b, c_b_new, c_b)

            # emit hidden states (zero at padding); fwd/bwd halves never collide
            out_ref[t_f, :, pl.ds(0, H)] = jnp.where(valid_f, h_f_new, 0.0)
            out_ref[t_b, :, pl.ds(H, H)] = jnp.where(valid_b, h_b_new, 0.0)
            return h_f, c_f, h_b, c_b

        z = jnp.zeros((BP, H), f32)                  # h0 = c0 = 0
        lax.fori_loop(0, T, body, (z, z, z, z), unroll=unroll)

    return kernel


def bilstm_pallas(sents_tensor, lengths, params, *, compute_dtype=jnp.float32):
    """PyTorch-equivalent forward: returns scores [B, T, out_size], float32.

    Set compute_dtype=jnp.bfloat16 on v6e/v7x for bf16 MXU operands and a bf16
    xproj scratch (accumulation and LSTM state stay f32).  Note: bf16 error
    compounds through the recurrence, so use a dtype-aware tolerance.
    """
    emb_table = params["embedding"]
    B, T = sents_tensor.shape
    E = emb_table.shape[1]
    H = params["whh_f"].shape[0]
    f32 = jnp.float32

    BP = max(8, ((B + 7) // 8) * 8)                  # pad batch to f32 sublane tile

    # ---- glue in XLA: time-major embedding gather + batch padding -----------
    # TODO(synk): for large vocab/T, gather embedding rows inside the kernel via
    # scalar-prefetched token ids + manual HBM DMA instead of materializing here.
    emb_tm = jnp.take(emb_table, sents_tensor.T, axis=0).astype(compute_dtype)  # [T,B,E]
    if BP > B:
        emb_tm = jnp.pad(emb_tm, ((0, 0), (0, BP - B), (0, 0)))
    lengths2d = jnp.zeros((BP, 1), jnp.int32).at[:B, 0].set(lengths.astype(jnp.int32))

    # ---- repack weights: gate order (i,f,g,o) -> (i,f,o,g), direction-blocked
    def reorder(w):
        w4 = w.reshape(w.shape[:-1] + (4, H))
        w4 = w4[..., jnp.array([0, 1, 3, 2]), :]
        return w4.reshape(w.shape[:-1] + (4 * H,))

    wih_big = jnp.concatenate(
        [reorder(params["wih_f"]), reorder(params["wih_b"])], axis=1
    ).astype(compute_dtype)                                           # [E, 8H]
    b_big = jnp.concatenate(
        [reorder(params["bf"]), reorder(params["bb"])], axis=1
    ).astype(f32)                                                     # [1, 8H]
    whh_f4 = reorder(params["whh_f"]).astype(compute_dtype)           # [H, 4H]
    whh_b4 = reorder(params["whh_b"]).astype(compute_dtype)           # [H, 4H]

    # unroll only while a live gate tile stays within a few vregs' worth
    if T <= 16:
        unroll = True
    elif BP * 8 * H <= 8192:
        unroll = 4
    else:
        unroll = 2

    kernel = _make_bilstm_kernel(T, BP, E, H, compute_dtype, unroll)

    def spec(shape):
        nd = len(shape)
        return pl.BlockSpec(shape, lambda i, _nd=nd: (0,) * _nd)

    # ---- generation-aware VMEM budget ----------------------------------------
    isz = jnp.dtype(compute_dtype).itemsize
    est = (T * BP * E * isz                       # resident embeddings
           + T * BP * 8 * H * isz                 # xproj scratch
           + T * BP * 2 * H * 4                   # hidden-state output
           + (E * 8 * H + 2 * H * 4 * H) * isz    # weights
           + 8 * H * 4 + BP * 4)                  # biases + lengths
    try:
        cap = int(pltpu.get_tpu_info().vmem_capacity_bytes)
    except Exception:
        cap = 64 * 1024 * 1024
    vmem_limit = int(min(int(0.85 * cap), max(32 * 1024 * 1024, 2 * est)))
    # TODO(synk): for very long T that busts the VMEM budget (esp. v7x 64 MiB),
    # stream T-chunks through an "arbitrary" grid axis carrying h/c in scratch,
    # and add a leading "parallel" batch-split axis to use both v7x TensorCores.

    h_tm = pl.pallas_call(
        kernel,
        out_shape=jax.ShapeDtypeStruct((T, BP, 2 * H), jnp.float32),
        grid=(1,),
        in_specs=[
            spec((T, BP, E)),        # time-major embeddings
            spec((BP, 1)),           # lengths
            spec((E, 8 * H)),        # fused input-to-hidden weights
            spec((H, 4 * H)),        # forward hidden-to-hidden weights
            spec((H, 4 * H)),        # backward hidden-to-hidden weights
            spec((1, 8 * H)),        # fused biases
        ],
        out_specs=spec((T, BP, 2 * H)),
        scratch_shapes=[pltpu.VMEM((T, BP, 8 * H), compute_dtype)],   # xproj
        compiler_params=pltpu.CompilerParams(
            dimension_semantics=("arbitrary",),
            vmem_limit_bytes=vmem_limit),
    )(emb_tm, lengths2d, wih_big, whh_f4, whh_b4, b_big)

    # ---- deferred output projection: ONE dense GEMM over all timesteps ------
    rnn = jnp.transpose(h_tm, (1, 0, 2))[:B]                         # [B, T, 2H]
    scores = rnn @ params["wlin"].astype(f32) + params["blin"].astype(f32)[0]
    return scores


def bilstm_reference(sents_tensor, lengths, params):
    """Pure-JAX reference mirroring PyTorch packed BiLSTM semantics."""
    emb = jnp.take(params["embedding"], sents_tensor, axis=0)     # [B, T, E]
    B, T, _ = emb.shape
    H = params["whh_f"].shape[0]
    lengths = lengths.astype(jnp.int32)

    def run_dir(wih, whh, b, reverse):
        def cell(carry, t):
            h, c = carry
            x_t = emb[:, t, :]
            gates = x_t @ wih + h @ whh + b
            i_g = jax.nn.sigmoid(gates[:, :H])
            f_g = jax.nn.sigmoid(gates[:, H:2 * H])
            g_g = jnp.tanh(gates[:, 2 * H:3 * H])
            o_g = jax.nn.sigmoid(gates[:, 3 * H:])
            c_new = f_g * c + i_g * g_g
            h_new = o_g * jnp.tanh(c_new)
            m = (lengths > t).astype(jnp.float32)[:, None]
            h = m * h_new + (1.0 - m) * h
            c = m * c_new + (1.0 - m) * c
            return (h, c), m * h
        ts = jnp.arange(T)[::-1] if reverse else jnp.arange(T)
        init = (jnp.zeros((B, H), jnp.float32), jnp.zeros((B, H), jnp.float32))
        _, outs = lax.scan(cell, init, ts)
        if reverse:
            outs = outs[::-1]
        return jnp.transpose(outs, (1, 0, 2))                     # [B, T, H]

    hf = run_dir(params["wih_f"], params["whh_f"], params["bf"][0], False)
    hb = run_dir(params["wih_b"], params["whh_b"], params["bb"][0], True)
    rnn = jnp.concatenate([hf, hb], axis=-1)
    return rnn @ params["wlin"] + params["blin"][0]


def init_params(key, vocab_size, emb_size, hidden_size, out_size):
    """Deterministic synthetic parameters (PyTorch-style uniform init)."""
    ks = jax.random.split(key, 11)
    k_lstm = 1.0 / jnp.sqrt(hidden_size)
    k_lin = 1.0 / jnp.sqrt(2.0 * hidden_size)
    u = lambda k, shape, s: jax.random.uniform(k, shape, jnp.float32, -s, s)
    return {
        "embedding": jax.random.normal(ks[0], (vocab_size, emb_size), jnp.float32),
        # forward direction (gate order i, f, g, o along 4H)
        "wih_f": u(ks[1], (emb_size, 4 * hidden_size), k_lstm),
        "whh_f": u(ks[2], (hidden_size, 4 * hidden_size), k_lstm),
        "bf":    u(ks[3], (1, 4 * hidden_size), k_lstm),   # b_ih + b_hh combined
        # reverse direction
        "wih_b": u(ks[4], (emb_size, 4 * hidden_size), k_lstm),
        "whh_b": u(ks[5], (hidden_size, 4 * hidden_size), k_lstm),
        "bb":    u(ks[6], (1, 4 * hidden_size), k_lstm),
        # linear head
        "wlin":  u(ks[7], (2 * hidden_size, out_size), k_lin),
        "blin":  u(ks[8], (1, out_size), k_lin),
    }


if __name__ == "__main__":
    VOCAB, EMB, HID, OUT = 100, 32, 32, 8
    B, T = 2, 8

    key = jax.random.PRNGKey(0)
    k_params, k_sents = jax.random.split(key)
    params = init_params(k_params, VOCAB, EMB, HID, OUT)

    sents = jax.random.randint(k_sents, (B, T), 0, VOCAB, dtype=jnp.int32)
    lengths = jnp.array([8, 5], dtype=jnp.int32)   # sorted descending, max == T

    scores = jax.block_until_ready(bilstm_pallas(sents, lengths, params))

    ref = bilstm_reference(sents, lengths, params)
    assert scores.shape == (B, T, OUT)
    max_err = float(jnp.max(jnp.abs(scores - ref)))
    assert jnp.allclose(scores, ref, rtol=1e-3, atol=1e-3), max_err

    print("KERNEL_OK")
</pallas_src>

<mosaic_0001>
module attributes {stable_mosaic.version = 11 : i64} {
  func.func @kernel(%arg0: i32, %arg1: memref<8x8x32xf32, #tpu.memory_space<vmem>>, %arg2: memref<8x1xi32, #tpu.memory_space<vmem>>, %arg3: memref<32x256xf32, #tpu.memory_space<vmem>>, %arg4: memref<32x128xf32, #tpu.memory_space<vmem>>, %arg5: memref<32x128xf32, #tpu.memory_space<vmem>>, %arg6: memref<1x256xf32, #tpu.memory_space<vmem>>, %arg7: memref<8x8x64xf32, #tpu.memory_space<vmem>>, %arg8: memref<8x8x256xf32, #tpu.memory_space<vmem>>) attributes {dimension_semantics = [#tpu.dimension_semantics<arbitrary>], iteration_bounds = array<i64: 1>, scalar_prefetch = 0 : i64, scratch_operands = 1 : i64, tpu.core_type = #tpu.core_type<tc>, window_params = [{pipeline_mode = #tpu.pipeline_mode<synchronous>, transform_indices = @transform_0, window_bounds = array<i64: 8, 8, 32>}, {pipeline_mode = #tpu.pipeline_mode<synchronous>, transform_indices = @transform_1, window_bounds = array<i64: 8, 1>}, {pipeline_mode = #tpu.pipeline_mode<synchronous>, transform_indices = @transform_2, window_bounds = array<i64: 32, 256>}, {pipeline_mode = #tpu.pipeline_mode<synchronous>, transform_indices = @transform_3, window_bounds = array<i64: 32, 128>}, {pipeline_mode = #tpu.pipeline_mode<synchronous>, transform_indices = @transform_4, window_bounds = array<i64: 32, 128>}, {pipeline_mode = #tpu.pipeline_mode<synchronous>, transform_indices = @transform_5, window_bounds = array<i64: 1, 256>}, {pipeline_mode = #tpu.pipeline_mode<synchronous>, transform_indices = @transform_6, window_bounds = array<i64: 8, 8, 64>}]} {
    %c0 = arith.constant 0 : index
    %c0_0 = arith.constant 0 : index
    %0 = vector.load %arg2[%c0, %c0_0] : memref<8x1xi32, #tpu.memory_space<vmem>>, vector<8x1xi32>
    %c0_1 = arith.constant 0 : index
    %c0_2 = arith.constant 0 : index
    %1 = vector.load %arg4[%c0_1, %c0_2] : memref<32x128xf32, #tpu.memory_space<vmem>>, vector<32x128xf32>
    %c0_3 = arith.constant 0 : index
    %c0_4 = arith.constant 0 : index
    %2 = vector.load %arg5[%c0_3, %c0_4] : memref<32x128xf32, #tpu.memory_space<vmem>>, vector<32x128xf32>
    %c0_5 = arith.constant 0 : index
    %c0_6 = arith.constant 0 : index
    %c0_7 = arith.constant 0 : index
    %3 = vector.load %arg1[%c0_5, %c0_6, %c0_7] : memref<8x8x32xf32, #tpu.memory_space<vmem>>, vector<8x8x32xf32>
    %4 = vector.shape_cast %3 : vector<8x8x32xf32> to vector<64x32xf32>
    %c0_8 = arith.constant 0 : index
    %c0_9 = arith.constant 0 : index
    %5 = vector.load %arg3[%c0_8, %c0_9] : memref<32x256xf32, #tpu.memory_space<vmem>>, vector<32x256xf32>
    %cst = arith.constant dense<0.000000e+00> : vector<64x256xf32>
    %6 = tpu.matmul %4, %5, %cst {dimension_numbers = #tpu.dot_dimension_numbers<[1], [0], [0], [1], [0, 0, 1, 1], [], []>} : vector<64x32xf32>, vector<32x256xf32>, vector<64x256xf32> -> vector<64x256xf32>
    %c0_10 = arith.constant 0 : index
    %c0_11 = arith.constant 0 : index
    %7 = vector.load %arg6[%c0_10, %c0_11] : memref<1x256xf32, #tpu.memory_space<vmem>>, vector<1x256xf32>
    %8 = vector.broadcast %7 : vector<1x256xf32> to vector<64x256xf32>
    %9 = arith.addf %6, %8 : vector<64x256xf32>
    %10 = vector.shape_cast %9 : vector<64x256xf32> to vector<8x8x256xf32>
    %c0_12 = arith.constant 0 : index
    %c0_13 = arith.constant 0 : index
    %c0_14 = arith.constant 0 : index
    %11 = vector.load %arg8[%c0_12, %c0_13, %c0_14] : memref<8x8x256xf32, #tpu.memory_space<vmem>>, vector<8x8x256xf32>
    tpu.vector_store %arg8[%c0_12, %c0_13, %c0_14], %10 {strides = array<i32>} : memref<8x8x256xf32, #tpu.memory_space<vmem>>, vector<8x8x256xf32>,
    %cst_15 = arith.constant 0.000000e+00 : f32
    %12 = vector.broadcast %cst_15 : f32 to vector<8x32xf32>
    %c0_i32 = arith.constant 0 : i32
    %c7_i32 = arith.constant 7 : i32
    %13 = arith.subi %c7_i32, %c0_i32 : i32
    %14 = arith.index_cast %c0_i32 : i32 to index
    %c0_16 = arith.constant 0 : index
    %c0_17 = arith.constant 0 : index
    %15 = vector.load %arg8[%14, %c0_16, %c0_17] : memref<8x8x256xf32, #tpu.memory_space<vmem>>, vector<1x8x128xf32>
    %16 = vector.shape_cast %15 : vector<1x8x128xf32> to vector<8x128xf32>
    %17 = arith.index_cast %13 : i32 to index
    %c0_18 = arith.constant 0 : index
    %c128 = arith.constant 128 : index
    %18 = vector.load %arg8[%17, %c0_18, %c128] : memref<8x8x256xf32, #tpu.memory_space<vmem>>, vector<1x8x128xf32>
    %19 = vector.shape_cast %18 : vector<1x8x128xf32> to vector<8x128xf32>
    %cst_19 = arith.constant dense<0.000000e+00> : vector<8x128xf32>
    %20 = tpu.matmul %12, %1, %cst_19 {dimension_numbers = #tpu.dot_dimension_numbers<[1], [0], [0], [1], [0, 0, 1, 1], [], []>} : vector<8x32xf32>, vector<32x128xf32>, vector<8x128xf32> -> vector<8x128xf32>
    %21 = arith.addf %16, %20 : vector<8x128xf32>
    %cst_20 = arith.constant dense<0.000000e+00> : vector<8x128xf32>
    %22 = tpu.matmul %12, %2, %cst_20 {dimension_numbers = #tpu.dot_dimension_numbers<[1], [0], [0], [1], [0, 0, 1, 1], [], []>} : vector<8x32xf32>, vector<32x128xf32>, vector<8x128xf32> -> vector<8x128xf32>
    %23 = arith.addf %19, %22 : vector<8x128xf32>
    %24 = vector.extract_strided_slice %21 {offsets = [0, 0], sizes = [8, 96], strides = [1, 1]} : vector<8x128xf32> to vector<8x96xf32>
    %25 = arith.negf %24 : vector<8x96xf32>
    %26 = math.exp %25 : vector<8x96xf32>
    %cst_21 = arith.constant 1.000000e+00 : f32
    %27 = vector.broadcast %cst_21 : f32 to vector<8x96xf32>
    %28 = arith.addf %27, %26 : vector<8x96xf32>
    %29 = arith.divf %27, %28 : vector<8x96xf32>
    %30 = vector.extract_strided_slice %29 {offsets = [0, 0], sizes = [8, 32], strides = [1, 1]} : vector<8x96xf32> to vector<8x32xf32>
    %31 = vector.extract_strided_slice %29 {offsets = [0, 32], sizes = [8, 32], strides = [1, 1]} : vector<8x96xf32> to vector<8x32xf32>
    %32 = vector.extract_strided_slice %29 {offsets = [0, 64], sizes = [8, 32], strides = [1, 1]} : vector<8x96xf32> to vector<8x32xf32>
    %33 = vector.extract_strided_slice %21 {offsets = [0, 96], sizes = [8, 32], strides = [1, 1]} : vector<8x128xf32> to vector<8x32xf32>
    %34 = math.tanh %33 : vector<8x32xf32>
    %35 = arith.mulf %31, %12 : vector<8x32xf32>
    %36 = arith.mulf %30, %34 : vector<8x32xf32>
    %37 = arith.addf %35, %36 : vector<8x32xf32>
    %38 = math.tanh %37 : vector<8x32xf32>
    %39 = arith.mulf %32, %38 : vector<8x32xf32>
    %40 = vector.extract_strided_slice %23 {offsets = [0, 0], sizes = [8, 96], strides = [1, 1]} : vector<8x128xf32> to vector<8x96xf32>
    %41 = arith.negf %40 : vector<8x96xf32>
    %42 = math.exp %41 : vector<8x96xf32>
    %cst_22 = arith.constant 1.000000e+00 : f32
    %43 = vector.broadcast %cst_22 : f32 to vector<8x96xf32>
    %44 = arith.addf %43, %42 : vector<8x96xf32>
    %45 = arith.divf %43, %44 : vector<8x96xf32>
    %46 = vector.extract_strided_slice %45 {offsets = [0, 0], sizes = [8, 32], strides = [1, 1]} : vector<8x96xf32> to vector<8x32xf32>
    %47 = vector.extract_strided_slice %45 {offsets = [0, 32], sizes = [8, 32], strides = [1, 1]} : vector<8x96xf32> to vector<8x32xf32>
    %48 = vector.extract_strided_slice %45 {offsets = [0, 64], sizes = [8, 32], strides = [1, 1]} : vector<8x96xf32> to vector<8x32xf32>
    %49 = vector.extract_strided_slice %23 {offsets = [0, 96], sizes = [8, 32], strides = [1, 1]} : vector<8x128xf32> to vector<8x32xf32>
    %50 = math.tanh %49 : vector<8x32xf32>
    %51 = arith.mulf %47, %12 : vector<8x32xf32>
    %52 = arith.mulf %46, %50 : vector<8x32xf32>
    %53 = arith.addf %51, %52 : vector<8x32xf32>
    %54 = math.tanh %53 : vector<8x32xf32>
    %55 = arith.mulf %48, %54 : vector<8x32xf32>
    %56 = vector.broadcast %c0_i32 : i32 to vector<8x1xi32>
    %57 = arith.cmpi sgt, %0, %56 : vector<8x1xi32>
    %58 = vector.broadcast %13 : i32 to vector<8x1xi32>
    %59 = arith.cmpi sgt, %0, %58 : vector<8x1xi32>
    %60 = vector.shape_cast %57 : vector<8x1xi1> to vector<8x1xi1>
    %61 = vector.broadcast %60 : vector<8x1xi1> to vector<8x32xi1>
    %62 = arith.select %61, %39, %12 : vector<8x32xi1>, vector<8x32xf32>
    %63 = vector.shape_cast %57 : vector<8x1xi1> to vector<8x1xi1>
    %64 = vector.broadcast %63 : vector<8x1xi1> to vector<8x32xi1>
    %65 = arith.select %64, %37, %12 : vector<8x32xi1>, vector<8x32xf32>
    %66 = vector.shape_cast %59 : vector<8x1xi1> to vector<8x1xi1>
    %67 = vector.broadcast %66 : vector<8x1xi1> to vector<8x32xi1>
    %68 = arith.select %67, %55, %12 : vector<8x32xi1>, vector<8x32xf32>
    %69 = vector.shape_cast %59 : vector<8x1xi1> to vector<8x1xi1>
    %70 = vector.broadcast %69 : vector<8x1xi1> to vector<8x32xi1>
    %71 = arith.select %70, %53, %12 : vector<8x32xi1>, vector<8x32xf32>
    %cst_23 = arith.constant 0.000000e+00 : f32
    %72 = vector.shape_cast %57 : vector<8x1xi1> to vector<8x1xi1>
    %73 = vector.broadcast %72 : vector<8x1xi1> to vector<8x32xi1>
    %74 = vector.broadcast %cst_23 : f32 to vector<8x32xf32>
    %75 = arith.select %73, %39, %74 : vector<8x32xi1>, vector<8x32xf32>
    %76 = arith.index_cast %c0_i32 : i32 to index
    %c0_24 = arith.constant 0 : index
    %c0_25 = arith.constant 0 : index
    %77 = vector.load %arg7[%76, %c0_24, %c0_25] : memref<8x8x64xf32, #tpu.memory_space<vmem>>, vector<1x8x32xf32>
    %78 = vector.shape_cast %77 : vector<1x8x32xf32> to vector<8x32xf32>
    %79 = vector.shape_cast %75 : vector<8x32xf32> to vector<1x8x32xf32>
    tpu.vector_store %arg7[%76, %c0_24, %c0_25], %79 {strides = array<i32>} : memref<8x8x64xf32, #tpu.memory_space<vmem>>, vector<1x8x32xf32>,
    %cst_26 = arith.constant 0.000000e+00 : f32
    %80 = vector.shape_cast %59 : vector<8x1xi1> to vector<8x1xi1>
    %81 = vector.broadcast %80 : vector<8x1xi1> to vector<8x32xi1>
    %82 = vector.broadcast %cst_26 : f32 to vector<8x32xf32>
    %83 = arith.select %81, %55, %82 : vector<8x32xi1>, vector<8x32xf32>
    %84 = arith.index_cast %13 : i32 to index
    %c0_27 = arith.constant 0 : index
    %c32 = arith.constant 32 : index
    %85 = vector.load %arg7[%84, %c0_27, %c32] : memref<8x8x64xf32, #tpu.memory_space<vmem>>, vector<1x8x32xf32>
    %86 = vector.shape_cast %85 : vector<1x8x32xf32> to vector<8x32xf32>
    %87 = vector.shape_cast %83 : vector<8x32xf32> to vector<1x8x32xf32>
    tpu.vector_store %arg7[%84, %c0_27, %c32], %87 {strides = array<i32>} : memref<8x8x64xf32, #tpu.memory_space<vmem>>, vector<1x8x32xf32>,
    %c1_i32 = arith.constant 1 : i32
    %c7_i32_28 = arith.constant 7 : i32
    %88 = arith.subi %c7_i32_28, %c1_i32 : i32
    %89 = arith.index_cast %c1_i32 : i32 to index
    %c0_29 = arith.constant 0 : index
    %c0_30 = arith.constant 0 : index
    %90 = vector.load %arg8[%89, %c0_29, %c0_30] : memref<8x8x256xf32, #tpu.memory_space<vmem>>, vector<1x8x128xf32>
    %91 = vector.shape_cast %90 : vector<1x8x128xf32> to vector<8x128xf32>
    %92 = arith.index_cast %88 : i32 to index
    %c0_31 = arith.constant 0 : index
    %c128_32 = arith.constant 128 : index
    %93 = vector.load %arg8[%92, %c0_31, %c128_32] : memref<8x8x256xf32, #tpu.memory_space<vmem>>, vector<1x8x128xf32>
    %94 = vector.shape_cast %93 : vector<1x8x128xf32> to vector<8x128xf32>
    %cst_33 = arith.constant dense<0.000000e+00> : vector<8x128xf32>
    %95 = tpu.matmul %62, %1, %cst_33 {dimension_numbers = #tpu.dot_dimension_numbers<[1], [0], [0], [1], [0, 0, 1, 1], [], []>} : vector<8x32xf32>, vector<32x128xf32>, vector<8x128xf32> -> vector<8x128xf32>
    %96 = arith.addf %91, %95 : vector<8x128xf32>
    %cst_34 = arith.constant dense<0.000000e+00> : vector<8x128xf32>
    %97 = tpu.matmul %68, %2, %cst_34 {dimension_numbers = #tpu.dot_dimension_numbers<[1], [0], [0], [1], [0, 0, 1, 1], [], []>} : vector<8x32xf32>, vector<32x128xf32>, vector<8x128xf32> -> vector<8x128xf32>
    %98 = arith.addf %94, %97 : vector<8x128xf32>
    %99 = vector.extract_strided_slice %96 {offsets = [0, 0], sizes = [8, 96], strides = [1, 1]} : vector<8x128xf32> to vector<8x96xf32>
    %100 = arith.negf %99 : vector<8x96xf32>
    %101 = math.exp %100 : vector<8x96xf32>
    %cst_35 = arith.constant 1.000000e+00 : f32
    %102 = vector.broadcast %cst_35 : f32 to vector<8x96xf32>
    %103 = arith.addf %102, %101 : vector<8x96xf32>
    %104 = arith.divf %102, %103 : vector<8x96xf32>
    %105 = vector.extract_strided_slice %104 {offsets = [0, 0], sizes = [8, 32], strides = [1, 1]} : vector<8x96xf32> to vector<8x32xf32>
    %106 = vector.extract_strided_slice %104 {offsets = [0, 32], sizes = [8, 32], strides = [1, 1]} : vector<8x96xf32> to vector<8x32xf32>
    %107 = vector.extract_strided_slice %104 {offsets = [0, 64], sizes = [8, 32], strides = [1, 1]} : vector<8x96xf32> to vector<8x32xf32>
    %108 = vector.extract_strided_slice %96 {offsets = [0, 96], sizes = [8, 32], strides = [1, 1]} : vector<8x128xf32> to vector<8x32xf32>
    %109 = math.tanh %108 : vector<8x32xf32>
    %110 = arith.mulf %106, %65 : vector<8x32xf32>
    %111 = arith.mulf %105, %109 : vector<8x32xf32>
    %112 = arith.addf %110, %111 : vector<8x32xf32>
    %113 = math.tanh %112 : vector<8x32xf32>
    %114 = arith.mulf %107, %113 : vector<8x32xf32>
    %115 = vector.extract_strided_slice %98 {offsets = [0, 0], sizes = [8, 96], strides = [1, 1]} : vector<8x128xf32> to vector<8x96xf32>
    %116 = arith.negf %115 : vector<8x96xf32>
    %117 = math.exp %116 : vector<8x96xf32>
    %cst_36 = arith.constant 1.000000e+00 : f32
    %118 = vector.broadcast %cst_36 : f32 to vector<8x96xf32>
    %119 = arith.addf %118, %117 : vector<8x96xf32>
    %120 = arith.divf %118, %119 : vector<8x96xf32>
    %121 = vector.extract_strided_slice %120 {offsets = [0, 0], sizes = [8, 32], strides = [1, 1]} : vector<8x96xf32> to vector<8x32xf32>
    %122 = vector.extract_strided_slice %120 {offsets = [0, 32], sizes = [8, 32], strides = [1, 1]} : vector<8x96xf32> to vector<8x32xf32>
    %123 = vector.extract_strided_slice %120 {offsets = [0, 64], sizes = [8, 32], strides = [1, 1]} : vector<8x96xf32> to vector<8x32xf32>
    %124 = vector.extract_strided_slice %98 {offsets = [0, 96], sizes = [8, 32], strides = [1, 1]} : vector<8x128xf32> to vector<8x32xf32>
    %125 = math.tanh %124 : vector<8x32xf32>
    %126 = arith.mulf %122, %71 : vector<8x32xf32>
    %127 = arith.mulf %121, %125 : vector<8x32xf32>
    %128 = arith.addf %126, %127 : vector<8x32xf32>
    %129 = math.tanh %128 : vector<8x32xf32>
    %130 = arith.mulf %123, %129 : vector<8x32xf32>
    %131 = vector.broadcast %c1_i32 : i32 to vector<8x1xi32>
    %132 = arith.cmpi sgt, %0, %131 : vector<8x1xi32>
    %133 = vector.broadcast %88 : i32 to vector<8x1xi32>
    %134 = arith.cmpi sgt, %0, %133 : vector<8x1xi32>
    %135 = vector.shape_cast %132 : vector<8x1xi1> to vector<8x1xi1>
    %136 = vector.broadcast %135 : vector<8x1xi1> to vector<8x32xi1>
    %137 = arith.select %136, %114, %62 : vector<8x32xi1>, vector<8x32xf32>
    %138 = vector.shape_cast %132 : vector<8x1xi1> to vector<8x1xi1>
    %139 = vector.broadcast %138 : vector<8x1xi1> to vector<8x32xi1>
    %140 = arith.select %139, %112, %65 : vector<8x32xi1>, vector<8x32xf32>
    %141 = vector.shape_cast %134 : vector<8x1xi1> to vector<8x1xi1>
    %142 = vector.broadcast %141 : vector<8x1xi1> to vector<8x32xi1>
    %143 = arith.select %142, %130, %68 : vector<8x32xi1>, vector<8x32xf32>
    %144 = vector.shape_cast %134 : vector<8x1xi1> to vector<8x1xi1>
    %145 = vector.broadcast %144 : vector<8x1xi1> to vector<8x32xi1>
    %146 = arith.select %145, %128, %71 : vector<8x32xi1>, vector<8x32xf32>
    %cst_37 = arith.constant 0.000000e+00 : f32
    %147 = vector.shape_cast %132 : vector<8x1xi1> to vector<8x1xi1>
    %148 = vector.broadcast %147 : vector<8x1xi1> to vector<8x32xi1>
    %149 = vector.broadcast %cst_37 : f32 to vector<8x32xf32>
    %150 = arith.select %148, %114, %149 : vector<8x32xi1>, vector<8x32xf32>
    %151 = arith.index_cast %c1_i32 : i32 to index
    %c0_38 = arith.constant 0 : index
    %c0_39 = arith.constant 0 : index
    %152 = vector.load %arg7[%151, %c0_38, %c0_39] : memref<8x8x64xf32, #tpu.memory_space<vmem>>, vector<1x8x32xf32>
    %153 = vector.shape_cast %152 : vector<1x8x32xf32> to vector<8x32xf32>
    %154 = vector.shape_cast %150 : vector<8x32xf32> to vector<1x8x32xf32>
    tpu.vector_store %arg7[%151, %c0_38, %c0_39], %154 {strides = array<i32>} : memref<8x8x64xf32, #tpu.memory_space<vmem>>, vector<1x8x32xf32>,
    %cst_40 = arith.constant 0.000000e+00 : f32
    %155 = vector.shape_cast %134 : vector<8x1xi1> to vector<8x1xi1>
    %156 = vector.broadcast %155 : vector<8x1xi1> to vector<8x32xi1>
    %157 = vector.broadcast %cst_40 : f32 to vector<8x32xf32>
    %158 = arith.select %156, %130, %157 : vector<8x32xi1>, vector<8x32xf32>
    %159 = arith.index_cast %88 : i32 to index
    %c0_41 = arith.constant 0 : index
    %c32_42 = arith.constant 32 : index
    %160 = vector.load %arg7[%159, %c0_41, %c32_42] : memref<8x8x64xf32, #tpu.memory_space<vmem>>, vector<1x8x32xf32>
    %161 = vector.shape_cast %160 : vector<1x8x32xf32> to vector<8x32xf32>
    %162 = vector.shape_cast %158 : vector<8x32xf32> to vector<1x8x32xf32>
    tpu.vector_store %arg7[%159, %c0_41, %c32_42], %162 {strides = array<i32>} : memref<8x8x64xf32, #tpu.memory_space<vmem>>, vector<1x8x32xf32>,
    %c2_i32 = arith.constant 2 : i32
    %c7_i32_43 = arith.constant 7 : i32
    %163 = arith.subi %c7_i32_43, %c2_i32 : i32
    %164 = arith.index_cast %c2_i32 : i32 to index
    %c0_44 = arith.constant 0 : index
    %c0_45 = arith.constant 0 : index
    %165 = vector.load %arg8[%164, %c0_44, %c0_45] : memref<8x8x256xf32, #tpu.memory_space<vmem>>, vector<1x8x128xf32>
    %166 = vector.shape_cast %165 : vector<1x8x128xf32> to vector<8x128xf32>
    %167 = arith.index_cast %163 : i32 to index
    %c0_46 = arith.constant 0 : index
    %c128_47 = arith.constant 128 : index
    %168 = vector.load %arg8[%167, %c0_46, %c128_47] : memref<8x8x256xf32, #tpu.memory_space<vmem>>, vector<1x8x128xf32>
    %169 = vector.shape_cast %168 : vector<1x8x128xf32> to vector<8x128xf32>
    %cst_48 = arith.constant dense<0.000000e+00> : vector<8x128xf32>
    %170 = tpu.matmul %137, %1, %cst_48 {dimension_numbers = #tpu.dot_dimension_numbers<[1], [0], [0], [1], [0, 0, 1, 1], [], []>} : vector<8x32xf32>, vector<32x128xf32>, vector<8x128xf32> -> vector<8x128xf32>
    %171 = arith.addf %166, %170 : vector<8x128xf32>
    %cst_49 = arith.constant dense<0.000000e+00> : vector<8x128xf32>
    %172 = tpu.matmul %143, %2, %cst_49 {dimension_numbers = #tpu.dot_dimension_numbers<[1], [0], [0], [1], [0, 0, 1, 1], [], []>} : vector<8x32xf32>, vector<32x128xf32>, vector<8x128xf32> -> vector<8x128xf32>
    %173 = arith.addf %169, %172 : vector<8x128xf32>
    %174 = vector.extract_strided_slice %171 {offsets = [0, 0], sizes = [8, 96], strides = [1, 1]} : vector<8x128xf32> to vector<8x96xf32>
    %175 = arith.negf %174 : vector<8x96xf32>
    %176 = math.exp %175 : vector<8x96xf32>
    %cst_50 = arith.constant 1.000000e+00 : f32
    %177 = vector.broadcast %cst_50 : f32 to vector<8x96xf32>
    %178 = arith.addf %177, %176 : vector<8x96xf32>
    %179 = arith.divf %177, %178 : vector<8x96xf32>
    %180 = vector.extract_strided_slice %179 {offsets = [0, 0], sizes = [8, 32], strides = [1, 1]} : vector<8x96xf32> to vector<8x32xf32>
    %181 = vector.extract_strided_slice %179 {offsets = [0, 32], sizes = [8, 32], strides = [1, 1]} : vector<8x96xf32> to vector<8x32xf32>
    %182 = vector.extract_strided_slice %179 {offsets = [0, 64], sizes = [8, 32], strides = [1, 1]} : vector<8x96xf32> to vector<8x32xf32>
    %183 = vector.extract_strided_slice %171 {offsets = [0, 96], sizes = [8, 32], strides = [1, 1]} : vector<8x128xf32> to vector<8x32xf32>
    %184 = math.tanh %183 : vector<8x32xf32>
    %185 = arith.mulf %181, %140 : vector<8x32xf32>
    %186 = arith.mulf %180, %184 : vector<8x32xf32>
    %187 = arith.addf %185, %186 : vector<8x32xf32>
    %188 = math.tanh %187 : vector<8x32xf32>
    %189 = arith.mulf %182, %188 : vector<8x32xf32>
    %190 = vector.extract_strided_slice %173 {offsets = [0, 0], sizes = [8, 96], strides = [1, 1]} : vector<8x128xf32> to vector<8x96xf32>
    %191 = arith.negf %190 : vector<8x96xf32>
    %192 = math.exp %191 : vector<8x96xf32>
    %cst_51 = arith.constant 1.000000e+00 : f32
    %193 = vector.broadcast %cst_51 : f32 to vector<8x96xf32>
    %194 = arith.addf %193, %192 : vector<8x96xf32>
    %195 = arith.divf %193, %194 : vector<8x96xf32>
    %196 = vector.extract_strided_slice %195 {offsets = [0, 0], sizes = [8, 32], strides = [1, 1]} : vector<8x96xf32> to vector<8x32xf32>
    %197 = vector.extract_strided_slice %195 {offsets = [0, 32], sizes = [8, 32], strides = [1, 1]} : vector<8x96xf32> to vector<8x32xf32>
    %198 = vector.extract_strided_slice %195 {offsets = [0, 64], sizes = [8, 32], strides = [1, 1]} : vector<8x96xf32> to vector<8x32xf32>
    %199 = vector.extract_strided_slice %173 {offsets = [0, 96], sizes = [8, 32], strides = [1, 1]} : vector<8x128xf32> to vector<8x32xf32>
    %200 = math.tanh %199 : vector<8x32xf32>
    %201 = arith.mulf %197, %146 : vector<8x32xf32>
    %202 = arith.mulf %196, %200 : vector<8x32xf32>
    %203 = arith.addf %201, %202 : vector<8x32xf32>
    %204 = math.tanh %203 : vector<8x32xf32>
    %205 = arith.mulf %198, %204 : vector<8x32xf32>
    %206 = vector.broadcast %c2_i32 : i32 to vector<8x1xi32>
    %207 = arith.cmpi sgt, %0, %206 : vector<8x1xi32>
    %208 = vector.broadcast %163 : i32 to vector<8x1xi32>
    %209 = arith.cmpi sgt, %0, %208 : vector<8x1xi32>
    %210 = vector.shape_cast %207 : vector<8x1xi1> to vector<8x1xi1>
    %211 = vector.broadcast %210 : vector<8x1xi1> to vector<8x32xi1>
    %212 = arith.select %211, %189, %137 : vector<8x32xi1>, vector<8x32xf32>
    %213 = vector.shape_cast %207 : vector<8x1xi1> to vector<8x1xi1>
    %214 = vector.broadcast %213 : vector<8x1xi1> to vector<8x32xi1>
    %215 = arith.select %214, %187, %140 : vector<8x32xi1>, vector<8x32xf32>
    %216 = vector.shape_cast %209 : vector<8x1xi1> to vector<8x1xi1>
    %217 = vector.broadcast %216 : vector<8x1xi1> to vector<8x32xi1>
    %218 = arith.select %217, %205, %143 : vector<8x32xi1>, vector<8x32xf32>
    %219 = vector.shape_cast %209 : vector<8x1xi1> to vector<8x1xi1>
    %220 = vector.broadcast %219 : vector<8x1xi1> to vector<8x32xi1>
    %221 = arith.select %220, %203, %146 : vector<8x32xi1>, vector<8x32xf32>
    %cst_52 = arith.constant 0.000000e+00 : f32
    %222 = vector.shape_cast %207 : vector<8x1xi1> to vector<8x1xi1>
    %223 = vector.broadcast %222 : vector<8x1xi1> to vector<8x32xi1>
    %224 = vector.broadcast %cst_52 : f32 to vector<8x32xf32>
    %225 = arith.select %223, %189, %224 : vector<8x32xi1>, vector<8x32xf32>
    %226 = arith.index_cast %c2_i32 : i32 to index
    %c0_53 = arith.constant 0 : index
    %c0_54 = arith.constant 0 : index
    %227 = vector.load %arg7[%226, %c0_53, %c0_54] : memref<8x8x64xf32, #tpu.memory_space<vmem>>, vector<1x8x32xf32>
    %228 = vector.shape_cast %227 : vector<1x8x32xf32> to vector<8x32xf32>
    %229 = vector.shape_cast %225 : vector<8x32xf32> to vector<1x8x32xf32>
    tpu.vector_store %arg7[%226, %c0_53, %c0_54], %229 {strides = array<i32>} : memref<8x8x64xf32, #tpu.memory_space<vmem>>, vector<1x8x32xf32>,
    %cst_55 = arith.constant 0.000000e+00 : f32
    %230 = vector.shape_cast %209 : vector<8x1xi1> to vector<8x1xi1>
    %231 = vector.broadcast %230 : vector<8x1xi1> to vector<8x32xi1>
    %232 = vector.broadcast %cst_55 : f32 to vector<8x32xf32>
    %233 = arith.select %231, %205, %232 : vector<8x32xi1>, vector<8x32xf32>
    %234 = arith.index_cast %163 : i32 to index
    %c0_56 = arith.constant 0 : index
    %c32_57 = arith.constant 32 : index
    %235 = vector.load %arg7[%234, %c0_56, %c32_57] : memref<8x8x64xf32, #tpu.memory_space<vmem>>, vector<1x8x32xf32>
    %236 = vector.shape_cast %235 : vector<1x8x32xf32> to vector<8x32xf32>
    %237 = vector.shape_cast %233 : vector<8x32xf32> to vector<1x8x32xf32>
    tpu.vector_store %arg7[%234, %c0_56, %c32_57], %237 {strides = array<i32>} : memref<8x8x64xf32, #tpu.memory_space<vmem>>, vector<1x8x32xf32>,
    %c3_i32 = arith.constant 3 : i32
    %c7_i32_58 = arith.constant 7 : i32
    %238 = arith.subi %c7_i32_58, %c3_i32 : i32
    %239 = arith.index_cast %c3_i32 : i32 to index
    %c0_59 = arith.constant 0 : index
    %c0_60 = arith.constant 0 : index
    %240 = vector.load %arg8[%239, %c0_59, %c0_60] : memref<8x8x256xf32, #tpu.memory_space<vmem>>, vector<1x8x128xf32>
    %241 = vector.shape_cast %240 : vector<1x8x128xf32> to vector<8x128xf32>
    %242 = arith.index_cast %238 : i32 to index
    %c0_61 = arith.constant 0 : index
    %c128_62 = arith.constant 128 : index
    %243 = vector.load %arg8[%242, %c0_61, %c128_62] : memref<8x8x256xf32, #tpu.memory_space<vmem>>, vector<1x8x128xf32>
    %244 = vector.shape_cast %243 : vector<1x8x128xf32> to vector<8x128xf32>
    %cst_63 = arith.constant dense<0.000000e+00> : vector<8x128xf32>
    %245 = tpu.matmul %212, %1, %cst_63 {dimension_numbers = #tpu.dot_dimension_numbers<[1], [0], [0], [1], [0, 0, 1, 1], [], []>} : vector<8x32xf32>, vector<32x128xf32>, vector<8x128xf32> -> vector<8x128xf32>
    %246 = arith.addf %241, %245 : vector<8x128xf32>
    %cst_64 = arith.constant dense<0.000000e+00> : vector<8x128xf32>
    %247 = tpu.matmul %218, %2, %cst_64 {dimension_numbers = #tpu.dot_dimension_numbers<[1], [0], [0], [1], [0, 0, 1, 1], [], []>} : vector<8x32xf32>, vector<32x128xf32>, vector<8x128xf32> -> vector<8x128xf32>
    %248 = arith.addf %244, %247 : vector<8x128xf32>
    %249 = vector.extract_strided_slice %246 {offsets = [0, 0], sizes = [8, 96], strides = [1, 1]} : vector<8x128xf32> to vector<8x96xf32>
    %250 = arith.negf %249 : vector<8x96xf32>
    %251 = math.exp %250 : vector<8x96xf32>
    %cst_65 = arith.constant 1.000000e+00 : f32
    %252 = vector.broadcast %cst_65 : f32 to vector<8x96xf32>
    %253 = arith.addf %252, %251 : vector<8x96xf32>
    %254 = arith.divf %252, %253 : vector<8x96xf32>
    %255 = vector.extract_strided_slice %254 {offsets = [0, 0], sizes = [8, 32], strides = [1, 1]} : vector<8x96xf32> to vector<8x32xf32>
    %256 = vector.extract_strided_slice %254 {offsets = [0, 32], sizes = [8, 32], strides = [1, 1]} : vector<8x96xf32> to vector<8x32xf32>
    %257 = vector.extract_strided_slice %254 {offsets = [0, 64], sizes = [8, 32], strides = [1, 1]} : vector<8x96xf32> to vector<8x32xf32>
    %258 = vector.extract_strided_slice %246 {offsets = [0, 96], sizes = [8, 32], strides = [1, 1]} : vector<8x128xf32> to vector<8x32xf32>
    %259 = math.tanh %258 : vector<8x32xf32>
    %260 = arith.mulf %256, %215 : vector<8x32xf32>
    %261 = arith.mulf %255, %259 : vector<8x32xf32>
    %262 = arith.addf %260, %261 : vector<8x32xf32>
    %263 = math.tanh %262 : vector<8x32xf32>
    %264 = arith.mulf %257, %263 : vector<8x32xf32>
    %265 = vector.extract_strided_slice %248 {offsets = [0, 0], sizes = [8, 96], strides = [1, 1]} : vector<8x128xf32> to vector<8x96xf32>
    %266 = arith.negf %265 : vector<8x96xf32>
    %267 = math.exp %266 : vector<8x96xf32>
    %cst_66 = arith.constant 1.000000e+00 : f32
    %268 = vector.broadcast %cst_66 : f32 to vector<8x96xf32>
    %269 = arith.addf %268, %267 : vector<8x96xf32>
    %270 = arith.divf %268, %269 : vector<8x96xf32>
    %271 = vector.extract_strided_slice %270 {offsets = [0, 0], sizes = [8, 32], strides = [1, 1]} : vector<8x96xf32> to vector<8x32xf32>
    %272 = vector.extract_strided_slice %270 {offsets = [0, 32], sizes = [8, 32], strides = [1, 1]} : vector<8x96xf32> to vector<8x32xf32>
    %273 = vector.extract_strided_slice %270 {offsets = [0, 64], sizes = [8, 32], strides = [1, 1]} : vector<8x96xf32> to vector<8x32xf32>
    %274 = vector.extract_strided_slice %248 {offsets = [0, 96], sizes = [8, 32], strides = [1, 1]} : vector<8x128xf32> to vector<8x32xf32>
    %275 = math.tanh %274 : vector<8x32xf32>
    %276 = arith.mulf %272, %221 : vector<8x32xf32>
    %277 = arith.mulf %271, %275 : vector<8x32xf32>
    %278 = arith.addf %276, %277 : vector<8x32xf32>
    %279 = math.tanh %278 : vector<8x32xf32>
    %280 = arith.mulf %273, %279 : vector<8x32xf32>
    %281 = vector.broadcast %c3_i32 : i32 to vector<8x1xi32>
    %282 = arith.cmpi sgt, %0, %281 : vector<8x1xi32>
    %283 = vector.broadcast %238 : i32 to vector<8x1xi32>
    %284 = arith.cmpi sgt, %0, %283 : vector<8x1xi32>
    %285 = vector.shape_cast %282 : vector<8x1xi1> to vector<8x1xi1>
    %286 = vector.broadcast %285 : vector<8x1xi1> to vector<8x32xi1>
    %287 = arith.select %286, %264, %212 : vector<8x32xi1>, vector<8x32xf32>
    %288 = vector.shape_cast %282 : vector<8x1xi1> to vector<8x1xi1>
    %289 = vector.broadcast %288 : vector<8x1xi1> to vector<8x32xi1>
    %290 = arith.select %289, %262, %215 : vector<8x32xi1>, vector<8x32xf32>
    %291 = vector.shape_cast %284 : vector<8x1xi1> to vector<8x1xi1>
    %292 = vector.broadcast %291 : vector<8x1xi1> to vector<8x32xi1>
    %293 = arith.select %292, %280, %218 : vector<8x32xi1>, vector<8x32xf32>
    %294 = vector.shape_cast %284 : vector<8x1xi1> to vector<8x1xi1>
    %295 = vector.broadcast %294 : vector<8x1xi1> to vector<8x32xi1>
    %296 = arith.select %295, %278, %221 : vector<8x32xi1>, vector<8x32xf32>
    %cst_67 = arith.constant 0.000000e+00 : f32
    %297 = vector.shape_cast %282 : vector<8x1xi1> to vector<8x1xi1>
    %298 = vector.broadcast %297 : vector<8x1xi1> to vector<8x32xi1>
    %299 = vector.broadcast %cst_67 : f32 to vector<8x32xf32>
    %300 = arith.select %298, %264, %299 : vector<8x32xi1>, vector<8x32xf32>
    %301 = arith.index_cast %c3_i32 : i32 to index
    %c0_68 = arith.constant 0 : index
    %c0_69 = arith.constant 0 : index
    %302 = vector.load %arg7[%301, %c0_68, %c0_69] : memref<8x8x64xf32, #tpu.memory_space<vmem>>, vector<1x8x32xf32>
    %303 = vector.shape_cast %302 : vector<1x8x32xf32> to vector<8x32xf32>
    %304 = vector.shape_cast %300 : vector<8x32xf32> to vector<1x8x32xf32>
    tpu.vector_store %arg7[%301, %c0_68, %c0_69], %304 {strides = array<i32>} : memref<8x8x64xf32, #tpu.memory_space<vmem>>, vector<1x8x32xf32>,
    %cst_70 = arith.constant 0.000000e+00 : f32
    %305 = vector.shape_cast %284 : vector<8x1xi1> to vector<8x1xi1>
    %306 = vector.broadcast %305 : vector<8x1xi1> to vector<8x32xi1>
    %307 = vector.broadcast %cst_70 : f32 to vector<8x32xf32>
    %308 = arith.select %306, %280, %307 : vector<8x32xi1>, vector<8x32xf32>
    %309 = arith.index_cast %238 : i32 to index
    %c0_71 = arith.constant 0 : index
    %c32_72 = arith.constant 32 : index
    %310 = vector.load %arg7[%309, %c0_71, %c32_72] : memref<8x8x64xf32, #tpu.memory_space<vmem>>, vector<1x8x32xf32>
    %311 = vector.shape_cast %310 : vector<1x8x32xf32> to vector<8x32xf32>
    %312 = vector.shape_cast %308 : vector<8x32xf32> to vector<1x8x32xf32>
    tpu.vector_store %arg7[%309, %c0_71, %c32_72], %312 {strides = array<i32>} : memref<8x8x64xf32, #tpu.memory_space<vmem>>, vector<1x8x32xf32>,
    %c4_i32 = arith.constant 4 : i32
    %c7_i32_73 = arith.constant 7 : i32
    %313 = arith.subi %c7_i32_73, %c4_i32 : i32
    %314 = arith.index_cast %c4_i32 : i32 to index
    %c0_74 = arith.constant 0 : index
    %c0_75 = arith.constant 0 : index
    %315 = vector.load %arg8[%314, %c0_74, %c0_75] : memref<8x8x256xf32, #tpu.memory_space<vmem>>, vector<1x8x128xf32>
    %316 = vector.shape_cast %315 : vector<1x8x128xf32> to vector<8x128xf32>
    %317 = arith.index_cast %313 : i32 to index
    %c0_76 = arith.constant 0 : index
    %c128_77 = arith.constant 128 : index
    %318 = vector.load %arg8[%317, %c0_76, %c128_77] : memref<8x8x256xf32, #tpu.memory_space<vmem>>, vector<1x8x128xf32>
    %319 = vector.shape_cast %318 : vector<1x8x128xf32> to vector<8x128xf32>
    %cst_78 = arith.constant dense<0.000000e+00> : vector<8x128xf32>
    %320 = tpu.matmul %287, %1, %cst_78 {dimension_numbers = #tpu.dot_dimension_numbers<[1], [0], [0], [1], [0, 0, 1, 1], [], []>} : vector<8x32xf32>, vector<32x128xf32>, vector<8x128xf32> -> vector<8x128xf32>
    %321 = arith.addf %316, %320 : vector<8x128xf32>
    %cst_79 = arith.constant dense<0.000000e+00> : vector<8x128xf32>
    %322 = tpu.matmul %293, %2, %cst_79 {dimension_numbers = #tpu.dot_dimension_numbers<[1], [0], [0], [1], [0, 0, 1, 1], [], []>} : vector<8x32xf32>, vector<32x128xf32>, vector<8x128xf32> -> vector<8x128xf32>
    %323 = arith.addf %319, %322 : vector<8x128xf32>
    %324 = vector.extract_strided_slice %321 {offsets = [0, 0], sizes = [8, 96], strides = [1, 1]} : vector<8x128xf32> to vector<8x96xf32>
    %325 = arith.negf %324 : vector<8x96xf32>
    %326 = math.exp %325 : vector<8x96xf32>
    %cst_80 = arith.constant 1.000000e+00 : f32
    %327 = vector.broadcast %cst_80 : f32 to vector<8x96xf32>
    %328 = arith.addf %327, %326 : vector<8x96xf32>
    %329 = arith.divf %327, %328 : vector<8x96xf32>
    %330 = vector.extract_strided_slice %329 {offsets = [0, 0], sizes = [8, 32], strides = [1, 1]} : vector<8x96xf32> to vector<8x32xf32>
    %331 = vector.extract_strided_slice %329 {offsets = [0, 32], sizes = [8, 32], strides = [1, 1]} : vector<8x96xf32> to vector<8x32xf32>
    %332 = vector.extract_strided_slice %329 {offsets = [0, 64], sizes = [8, 32], strides = [1, 1]} : vector<8x96xf32> to vector<8x32xf32>
    %333 = vector.extract_strided_slice %321 {offsets = [0, 96], sizes = [8, 32], strides = [1, 1]} : vector<8x128xf32> to vector<8x32xf32>
    %334 = math.tanh %333 : vector<8x32xf32>
    %335 = arith.mulf %331, %290 : vector<8x32xf32>
    %336 = arith.mulf %330, %334 : vector<8x32xf32>
    %337 = arith.addf %335, %336 : vector<8x32xf32>
    %338 = math.tanh %337 : vector<8x32xf32>
    %339 = arith.mulf %332, %338 : vector<8x32xf32>
    %340 = vector.extract_strided_slice %323 {offsets = [0, 0], sizes = [8, 96], strides = [1, 1]} : vector<8x128xf32> to vector<8x96xf32>
    %341 = arith.negf %340 : vector<8x96xf32>
    %342 = math.exp %341 : vector<8x96xf32>
    %cst_81 = arith.constant 1.000000e+00 : f32
    %343 = vector.broadcast %cst_81 : f32 to vector<8x96xf32>
    %344 = arith.addf %343, %342 : vector<8x96xf32>
    %345 = arith.divf %343, %344 : vector<8x96xf32>
    %346 = vector.extract_strided_slice %345 {offsets = [0, 0], sizes = [8, 32], strides = [1, 1]} : vector<8x96xf32> to vector<8x32xf32>
    %347 = vector.extract_strided_slice %345 {offsets = [0, 32], sizes = [8, 32], strides = [1, 1]} : vector<8x96xf32> to vector<8x32xf32>
    %348 = vector.extract_strided_slice %345 {offsets = [0, 64], sizes = [8, 32], strides = [1, 1]} : vector<8x96xf32> to vector<8x32xf32>
    %349 = vector.extract_strided_slice %323 {offsets = [0, 96], sizes = [8, 32], strides = [1, 1]} : vector<8x128xf32> to vector<8x32xf32>
    %350 = math.tanh %349 : vector<8x32xf32>
    %351 = arith.mulf %347, %296 : vector<8x32xf32>
    %352 = arith.mulf %346, %350 : vector<8x32xf32>
    %353 = arith.addf %351, %352 : vector<8x32xf32>
    %354 = math.tanh %353 : vector<8x32xf32>
    %355 = arith.mulf %348, %354 : vector<8x32xf32>
    %356 = vector.broadcast %c4_i32 : i32 to vector<8x1xi32>
    %357 = arith.cmpi sgt, %0, %356 : vector<8x1xi32>
    %358 = vector.broadcast %313 : i32 to vector<8x1xi32>
    %359 = arith.cmpi sgt, %0, %358 : vector<8x1xi32>
    %360 = vector.shape_cast %357 : vector<8x1xi1> to vector<8x1xi1>
    %361 = vector.broadcast %360 : vector<8x1xi1> to vector<8x32xi1>
    %362 = arith.select %361, %339, %287 : vector<8x32xi1>, vector<8x32xf32>
    %363 = vector.shape_cast %357 : vector<8x1xi1> to vector<8x1xi1>
    %364 = vector.broadcast %363 : vector<8x1xi1> to vector<8x32xi1>
    %365 = arith.select %364, %337, %290 : vector<8x32xi1>, vector<8x32xf32>
    %366 = vector.shape_cast %359 : vector<8x1xi1> to vector<8x1xi1>
    %367 = vector.broadcast %366 : vector<8x1xi1> to vector<8x32xi1>
    %368 = arith.select %367, %355, %293 : vector<8x32xi1>, vector<8x32xf32>
    %369 = vector.shape_cast %359 : vector<8x1xi1> to vector<8x1xi1>
    %370 = vector.broadcast %369 : vector<8x1xi1> to vector<8x32xi1>
    %371 = arith.select %370, %353, %296 : vector<8x32xi1>, vector<8x32xf32>
    %cst_82 = arith.constant 0.000000e+00 : f32
    %372 = vector.shape_cast %357 : vector<8x1xi1> to vector<8x1xi1>
    %373 = vector.broadcast %372 : vector<8x1xi1> to vector<8x32xi1>
    %374 = vector.broadcast %cst_82 : f32 to vector<8x32xf32>
    %375 = arith.select %373, %339, %374 : vector<8x32xi1>, vector<8x32xf32>
    %376 = arith.index_cast %c4_i32 : i32 to index
    %c0_83 = arith.constant 0 : index
    %c0_84 = arith.constant 0 : index
    %377 = vector.load %arg7[%376, %c0_83, %c0_84] : memref<8x8x64xf32, #tpu.memory_space<vmem>>, vector<1x8x32xf32>
    %378 = vector.shape_cast %377 : vector<1x8x32xf32> to vector<8x32xf32>
    %379 = vector.shape_cast %375 : vector<8x32xf32> to vector<1x8x32xf32>
    tpu.vector_store %arg7[%376, %c0_83, %c0_84], %379 {strides = array<i32>} : memref<8x8x64xf32, #tpu.memory_space<vmem>>, vector<1x8x32xf32>,
    %cst_85 = arith.constant 0.000000e+00 : f32
    %380 = vector.shape_cast %359 : vector<8x1xi1> to vector<8x1xi1>
    %381 = vector.broadcast %380 : vector<8x1xi1> to vector<8x32xi1>
    %382 = vector.broadcast %cst_85 : f32 to vector<8x32xf32>
    %383 = arith.select %381, %355, %382 : vector<8x32xi1>, vector<8x32xf32>
    %384 = arith.index_cast %313 : i32 to index
    %c0_86 = arith.constant 0 : index
    %c32_87 = arith.constant 32 : index
    %385 = vector.load %arg7[%384, %c0_86, %c32_87] : memref<8x8x64xf32, #tpu.memory_space<vmem>>, vector<1x8x32xf32>
    %386 = vector.shape_cast %385 : vector<1x8x32xf32> to vector<8x32xf32>
    %387 = vector.shape_cast %383 : vector<8x32xf32> to vector<1x8x32xf32>
    tpu.vector_store %arg7[%384, %c0_86, %c32_87], %387 {strides = array<i32>} : memref<8x8x64xf32, #tpu.memory_space<vmem>>, vector<1x8x32xf32>,
    %c5_i32 = arith.constant 5 : i32
    %c7_i32_88 = arith.constant 7 : i32
    %388 = arith.subi %c7_i32_88, %c5_i32 : i32
    %389 = arith.index_cast %c5_i32 : i32 to index
    %c0_89 = arith.constant 0 : index
    %c0_90 = arith.constant 0 : index
    %390 = vector.load %arg8[%389, %c0_89, %c0_90] : memref<8x8x256xf32, #tpu.memory_space<vmem>>, vector<1x8x128xf32>
    %391 = vector.shape_cast %390 : vector<1x8x128xf32> to vector<8x128xf32>
    %392 = arith.index_cast %388 : i32 to index
    %c0_91 = arith.constant 0 : index
    %c128_92 = arith.constant 128 : index
    %393 = vector.load %arg8[%392, %c0_91, %c128_92] : memref<8x8x256xf32, #tpu.memory_space<vmem>>, vector<1x8x128xf32>
    %394 = vector.shape_cast %393 : vector<1x8x128xf32> to vector<8x128xf32>
    %cst_93 = arith.constant dense<0.000000e+00> : vector<8x128xf32>
    %395 = tpu.matmul %362, %1, %cst_93 {dimension_numbers = #tpu.dot_dimension_numbers<[1], [0], [0], [1], [0, 0, 1, 1], [], []>} : vector<8x32xf32>, vector<32x128xf32>, vector<8x128xf32> -> vector<8x128xf32>
    %396 = arith.addf %391, %395 : vector<8x128xf32>
    %cst_94 = arith.constant dense<0.000000e+00> : vector<8x128xf32>
    %397 = tpu.matmul %368, %2, %cst_94 {dimension_numbers = #tpu.dot_dimension_numbers<[1], [0], [0], [1], [0, 0, 1, 1], [], []>} : vector<8x32xf32>, vector<32x128xf32>, vector<8x128xf32> -> vector<8x128xf32>
    %398 = arith.addf %394, %397 : vector<8x128xf32>
    %399 = vector.extract_strided_slice %396 {offsets = [0, 0], sizes = [8, 96], strides = [1, 1]} : vector<8x128xf32> to vector<8x96xf32>
    %400 = arith.negf %399 : vector<8x96xf32>
    %401 = math.exp %400 : vector<8x96xf32>
    %cst_95 = arith.constant 1.000000e+00 : f32
    %402 = vector.broadcast %cst_95 : f32 to vector<8x96xf32>
    %403 = arith.addf %402, %401 : vector<8x96xf32>
    %404 = arith.divf %402, %403 : vector<8x96xf32>
    %405 = vector.extract_strided_slice %404 {offsets = [0, 0], sizes = [8, 32], strides = [1, 1]} : vector<8x96xf32> to vector<8x32xf32>
    %406 = vector.extract_strided_slice %404 {offsets = [0, 32], sizes = [8, 32], strides = [1, 1]} : vector<8x96xf32> to vector<8x32xf32>
    %407 = vector.extract_strided_slice %404 {offsets = [0, 64], sizes = [8, 32], strides = [1, 1]} : vector<8x96xf32> to vector<8x32xf32>
    %408 = vector.extract_strided_slice %396 {offsets = [0, 96], sizes = [8, 32], strides = [1, 1]} : vector<8x128xf32> to vector<8x32xf32>
    %409 = math.tanh %408 : vector<8x32xf32>
    %410 = arith.mulf %406, %365 : vector<8x32xf32>
    %411 = arith.mulf %405, %409 : vector<8x32xf32>
    %412 = arith.addf %410, %411 : vector<8x32xf32>
    %413 = math.tanh %412 : vector<8x32xf32>
    %414 = arith.mulf %407, %413 : vector<8x32xf32>
    %415 = vector.extract_strided_slice %398 {offsets = [0, 0], sizes = [8, 96], strides = [1, 1]} : vector<8x128xf32> to vector<8x96xf32>
    %416 = arith.negf %415 : vector<8x96xf32>
    %417 = math.exp %416 : vector<8x96xf32>
    %cst_96 = arith.constant 1.000000e+00 : f32
    %418 = vector.broadcast %cst_96 : f32 to vector<8x96xf32>
    %419 = arith.addf %418, %417 : vector<8x96xf32>
    %420 = arith.divf %418, %419 : vector<8x96xf32>
    %421 = vector.extract_strided_slice %420 {offsets = [0, 0], sizes = [8, 32], strides = [1, 1]} : vector<8x96xf32> to vector<8x32xf32>
    %422 = vector.extract_strided_slice %420 {offsets = [0, 32], sizes = [8, 32], strides = [1, 1]} : vector<8x96xf32> to vector<8x32xf32>
    %423 = vector.extract_strided_slice %420 {offsets = [0, 64], sizes = [8, 32], strides = [1, 1]} : vector<8x96xf32> to vector<8x32xf32>
    %424 = vector.extract_strided_slice %398 {offsets = [0, 96], sizes = [8, 32], strides = [1, 1]} : vector<8x128xf32> to vector<8x32xf32>
    %425 = math.tanh %424 : vector<8x32xf32>
    %426 = arith.mulf %422, %371 : vector<8x32xf32>
    %427 = arith.mulf %421, %425 : vector<8x32xf32>
    %428 = arith.addf %426, %427 : vector<8x32xf32>
    %429 = math.tanh %428 : vector<8x32xf32>
    %430 = arith.mulf %423, %429 : vector<8x32xf32>
    %431 = vector.broadcast %c5_i32 : i32 to vector<8x1xi32>
    %432 = arith.cmpi sgt, %0, %431 : vector<8x1xi32>
    %433 = vector.broadcast %388 : i32 to vector<8x1xi32>
    %434 = arith.cmpi sgt, %0, %433 : vector<8x1xi32>
    %435 = vector.shape_cast %432 : vector<8x1xi1> to vector<8x1xi1>
    %436 = vector.broadcast %435 : vector<8x1xi1> to vector<8x32xi1>
    %437 = arith.select %436, %414, %362 : vector<8x32xi1>, vector<8x32xf32>
    %438 = vector.shape_cast %432 : vector<8x1xi1> to vector<8x1xi1>
    %439 = vector.broadcast %438 : vector<8x1xi1> to vector<8x32xi1>
    %440 = arith.select %439, %412, %365 : vector<8x32xi1>, vector<8x32xf32>
    %441 = vector.shape_cast %434 : vector<8x1xi1> to vector<8x1xi1>
    %442 = vector.broadcast %441 : vector<8x1xi1> to vector<8x32xi1>
    %443 = arith.select %442, %430, %368 : vector<8x32xi1>, vector<8x32xf32>
    %444 = vector.shape_cast %434 : vector<8x1xi1> to vector<8x1xi1>
    %445 = vector.broadcast %444 : vector<8x1xi1> to vector<8x32xi1>
    %446 = arith.select %445, %428, %371 : vector<8x32xi1>, vector<8x32xf32>
    %cst_97 = arith.constant 0.000000e+00 : f32
    %447 = vector.shape_cast %432 : vector<8x1xi1> to vector<8x1xi1>
    %448 = vector.broadcast %447 : vector<8x1xi1> to vector<8x32xi1>
    %449 = vector.broadcast %cst_97 : f32 to vector<8x32xf32>
    %450 = arith.select %448, %414, %449 : vector<8x32xi1>, vector<8x32xf32>
    %451 = arith.index_cast %c5_i32 : i32 to index
    %c0_98 = arith.constant 0 : index
    %c0_99 = arith.constant 0 : index
    %452 = vector.load %arg7[%451, %c0_98, %c0_99] : memref<8x8x64xf32, #tpu.memory_space<vmem>>, vector<1x8x32xf32>
    %453 = vector.shape_cast %452 : vector<1x8x32xf32> to vector<8x32xf32>
    %454 = vector.shape_cast %450 : vector<8x32xf32> to vector<1x8x32xf32>
    tpu.vector_store %arg7[%451, %c0_98, %c0_99], %454 {strides = array<i32>} : memref<8x8x64xf32, #tpu.memory_space<vmem>>, vector<1x8x32xf32>,
    %cst_100 = arith.constant 0.000000e+00 : f32
    %455 = vector.shape_cast %434 : vector<8x1xi1> to vector<8x1xi1>
    %456 = vector.broadcast %455 : vector<8x1xi1> to vector<8x32xi1>
    %457 = vector.broadcast %cst_100 : f32 to vector<8x32xf32>
    %458 = arith.select %456, %430, %457 : vector<8x32xi1>, vector<8x32xf32>
    %459 = arith.index_cast %388 : i32 to index
    %c0_101 = arith.constant 0 : index
    %c32_102 = arith.constant 32 : index
    %460 = vector.load %arg7[%459, %c0_101, %c32_102] : memref<8x8x64xf32, #tpu.memory_space<vmem>>, vector<1x8x32xf32>
    %461 = vector.shape_cast %460 : vector<1x8x32xf32> to vector<8x32xf32>
    %462 = vector.shape_cast %458 : vector<8x32xf32> to vector<1x8x32xf32>
    tpu.vector_store %arg7[%459, %c0_101, %c32_102], %462 {strides = array<i32>} : memref<8x8x64xf32, #tpu.memory_space<vmem>>, vector<1x8x32xf32>,
    %c6_i32 = arith.constant 6 : i32
    %c7_i32_103 = arith.constant 7 : i32
    %463 = arith.subi %c7_i32_103, %c6_i32 : i32
    %464 = arith.index_cast %c6_i32 : i32 to index
    %c0_104 = arith.constant 0 : index
    %c0_105 = arith.constant 0 : index
    %465 = vector.load %arg8[%464, %c0_104, %c0_105] : memref<8x8x256xf32, #tpu.memory_space<vmem>>, vector<1x8x128xf32>
    %466 = vector.shape_cast %465 : vector<1x8x128xf32> to vector<8x128xf32>
    %467 = arith.index_cast %463 : i32 to index
    %c0_106 = arith.constant 0 : index
    %c128_107 = arith.constant 128 : index
    %468 = vector.load %arg8[%467, %c0_106, %c128_107] : memref<8x8x256xf32, #tpu.memory_space<vmem>>, vector<1x8x128xf32>
    %469 = vector.shape_cast %468 : vector<1x8x128xf32> to vector<8x128xf32>
    %cst_108 = arith.constant dense<0.000000e+00> : vector<8x128xf32>
    %470 = tpu.matmul %437, %1, %cst_108 {dimension_numbers = #tpu.dot_dimension_numbers<[1], [0], [0], [1], [0, 0, 1, 1], [], []>} : vector<8x32xf32>, vector<32x128xf32>, vector<8x128xf32> -> vector<8x128xf32>
    %471 = arith.addf %466, %470 : vector<8x128xf32>
    %cst_109 = arith.constant dense<0.000000e+00> : vector<8x128xf32>
    %472 = tpu.matmul %443, %2, %cst_109 {dimension_numbers = #tpu.dot_dimension_numbers<[1], [0], [0], [1], [0, 0, 1, 1], [], []>} : vector<8x32xf32>, vector<32x128xf32>, vector<8x128xf32> -> vector<8x128xf32>
    %473 = arith.addf %469, %472 : vector<8x128xf32>
    %474 = vector.extract_strided_slice %471 {offsets = [0, 0], sizes = [8, 96], strides = [1, 1]} : vector<8x128xf32> to vector<8x96xf32>
    %475 = arith.negf %474 : vector<8x96xf32>
    %476 = math.exp %475 : vector<8x96xf32>
    %cst_110 = arith.constant 1.000000e+00 : f32
    %477 = vector.broadcast %cst_110 : f32 to vector<8x96xf32>
    %478 = arith.addf %477, %476 : vector<8x96xf32>
    %479 = arith.divf %477, %478 : vector<8x96xf32>
    %480 = vector.extract_strided_slice %479 {offsets = [0, 0], sizes = [8, 32], strides = [1, 1]} : vector<8x96xf32> to vector<8x32xf32>
    %481 = vector.extract_strided_slice %479 {offsets = [0, 32], sizes = [8, 32], strides = [1, 1]} : vector<8x96xf32> to vector<8x32xf32>
    %482 = vector.extract_strided_slice %479 {offsets = [0, 64], sizes = [8, 32], strides = [1, 1]} : vector<8x96xf32> to vector<8x32xf32>
    %483 = vector.extract_strided_slice %471 {offsets = [0, 96], sizes = [8, 32], strides = [1, 1]} : vector<8x128xf32> to vector<8x32xf32>
    %484 = math.tanh %483 : vector<8x32xf32>
    %485 = arith.mulf %481, %440 : vector<8x32xf32>
    %486 = arith.mulf %480, %484 : vector<8x32xf32>
    %487 = arith.addf %485, %486 : vector<8x32xf32>
    %488 = math.tanh %487 : vector<8x32xf32>
    %489 = arith.mulf %482, %488 : vector<8x32xf32>
    %490 = vector.extract_strided_slice %473 {offsets = [0, 0], sizes = [8, 96], strides = [1, 1]} : vector<8x128xf32> to vector<8x96xf32>
    %491 = arith.negf %490 : vector<8x96xf32>
    %492 = math.exp %491 : vector<8x96xf32>
    %cst_111 = arith.constant 1.000000e+00 : f32
    %493 = vector.broadcast %cst_111 : f32 to vector<8x96xf32>
    %494 = arith.addf %493, %492 : vector<8x96xf32>
    %495 = arith.divf %493, %494 : vector<8x96xf32>
    %496 = vector.extract_strided_slice %495 {offsets = [0, 0], sizes = [8, 32], strides = [1, 1]} : vector<8x96xf32> to vector<8x32xf32>
    %497 = vector.extract_strided_slice %495 {offsets = [0, 32], sizes = [8, 32], strides = [1, 1]} : vector<8x96xf32> to vector<8x32xf32>
    %498 = vector.extract_strided_slice %495 {offsets = [0, 64], sizes = [8, 32], strides = [1, 1]} : vector<8x96xf32> to vector<8x32xf32>
    %499 = vector.extract_strided_slice %473 {offsets = [0, 96], sizes = [8, 32], strides = [1, 1]} : vector<8x128xf32> to vector<8x32xf32>
    %500 = math.tanh %499 : vector<8x32xf32>
    %501 = arith.mulf %497, %446 : vector<8x32xf32>
    %502 = arith.mulf %496, %500 : vector<8x32xf32>
    %503 = arith.addf %501, %502 : vector<8x32xf32>
    %504 = math.tanh %503 : vector<8x32xf32>
    %505 = arith.mulf %498, %504 : vector<8x32xf32>
    %506 = vector.broadcast %c6_i32 : i32 to vector<8x1xi32>
    %507 = arith.cmpi sgt, %0, %506 : vector<8x1xi32>
    %508 = vector.broadcast %463 : i32 to vector<8x1xi32>
    %509 = arith.cmpi sgt, %0, %508 : vector<8x1xi32>
    %510 = vector.shape_cast %507 : vector<8x1xi1> to vector<8x1xi1>
    %511 = vector.broadcast %510 : vector<8x1xi1> to vector<8x32xi1>
    %512 = arith.select %511, %489, %437 : vector<8x32xi1>, vector<8x32xf32>
    %513 = vector.shape_cast %507 : vector<8x1xi1> to vector<8x1xi1>
    %514 = vector.broadcast %513 : vector<8x1xi1> to vector<8x32xi1>
    %515 = arith.select %514, %487, %440 : vector<8x32xi1>, vector<8x32xf32>
    %516 = vector.shape_cast %509 : vector<8x1xi1> to vector<8x1xi1>
    %517 = vector.broadcast %516 : vector<8x1xi1> to vector<8x32xi1>
    %518 = arith.select %517, %505, %443 : vector<8x32xi1>, vector<8x32xf32>
    %519 = vector.shape_cast %509 : vector<8x1xi1> to vector<8x1xi1>
    %520 = vector.broadcast %519 : vector<8x1xi1> to vector<8x32xi1>
    %521 = arith.select %520, %503, %446 : vector<8x32xi1>, vector<8x32xf32>
    %cst_112 = arith.constant 0.000000e+00 : f32
    %522 = vector.shape_cast %507 : vector<8x1xi1> to vector<8x1xi1>
    %523 = vector.broadcast %522 : vector<8x1xi1> to vector<8x32xi1>
    %524 = vector.broadcast %cst_112 : f32 to vector<8x32xf32>
    %525 = arith.select %523, %489, %524 : vector<8x32xi1>, vector<8x32xf32>
    %526 = arith.index_cast %c6_i32 : i32 to index
    %c0_113 = arith.constant 0 : index
    %c0_114 = arith.constant 0 : index
    %527 = vector.load %arg7[%526, %c0_113, %c0_114] : memref<8x8x64xf32, #tpu.memory_space<vmem>>, vector<1x8x32xf32>
    %528 = vector.shape_cast %527 : vector<1x8x32xf32> to vector<8x32xf32>
    %529 = vector.shape_cast %525 : vector<8x32xf32> to vector<1x8x32xf32>
    tpu.vector_store %arg7[%526, %c0_113, %c0_114], %529 {strides = array<i32>} : memref<8x8x64xf32, #tpu.memory_space<vmem>>, vector<1x8x32xf32>,
    %cst_115 = arith.constant 0.000000e+00 : f32
    %530 = vector.shape_cast %509 : vector<8x1xi1> to vector<8x1xi1>
    %531 = vector.broadcast %530 : vector<8x1xi1> to vector<8x32xi1>
    %532 = vector.broadcast %cst_115 : f32 to vector<8x32xf32>
    %533 = arith.select %531, %505, %532 : vector<8x32xi1>, vector<8x32xf32>
    %534 = arith.index_cast %463 : i32 to index
    %c0_116 = arith.constant 0 : index
    %c32_117 = arith.constant 32 : index
    %535 = vector.load %arg7[%534, %c0_116, %c32_117] : memref<8x8x64xf32, #tpu.memory_space<vmem>>, vector<1x8x32xf32>
    %536 = vector.shape_cast %535 : vector<1x8x32xf32> to vector<8x32xf32>
    %537 = vector.shape_cast %533 : vector<8x32xf32> to vector<1x8x32xf32>
    tpu.vector_store %arg7[%534, %c0_116, %c32_117], %537 {strides = array<i32>} : memref<8x8x64xf32, #tpu.memory_space<vmem>>, vector<1x8x32xf32>,
    %c7_i32_118 = arith.constant 7 : i32
    %c7_i32_119 = arith.constant 7 : i32
    %538 = arith.subi %c7_i32_119, %c7_i32_118 : i32
    %539 = arith.index_cast %c7_i32_118 : i32 to index
    %c0_120 = arith.constant 0 : index
    %c0_121 = arith.constant 0 : index
    %540 = vector.load %arg8[%539, %c0_120, %c0_121] : memref<8x8x256xf32, #tpu.memory_space<vmem>>, vector<1x8x128xf32>
    %541 = vector.shape_cast %540 : vector<1x8x128xf32> to vector<8x128xf32>
    %542 = arith.index_cast %538 : i32 to index
    %c0_122 = arith.constant 0 : index
    %c128_123 = arith.constant 128 : index
    %543 = vector.load %arg8[%542, %c0_122, %c128_123] : memref<8x8x256xf32, #tpu.memory_space<vmem>>, vector<1x8x128xf32>
    %544 = vector.shape_cast %543 : vector<1x8x128xf32> to vector<8x128xf32>
    %cst_124 = arith.constant dense<0.000000e+00> : vector<8x128xf32>
    %545 = tpu.matmul %512, %1, %cst_124 {dimension_numbers = #tpu.dot_dimension_numbers<[1], [0], [0], [1], [0, 0, 1, 1], [], []>} : vector<8x32xf32>, vector<32x128xf32>, vector<8x128xf32> -> vector<8x128xf32>
    %546 = arith.addf %541, %545 : vector<8x128xf32>
    %cst_125 = arith.constant dense<0.000000e+00> : vector<8x128xf32>
    %547 = tpu.matmul %518, %2, %cst_125 {dimension_numbers = #tpu.dot_dimension_numbers<[1], [0], [0], [1], [0, 0, 1, 1], [], []>} : vector<8x32xf32>, vector<32x128xf32>, vector<8x128xf32> -> vector<8x128xf32>
    %548 = arith.addf %544, %547 : vector<8x128xf32>
    %549 = vector.extract_strided_slice %546 {offsets = [0, 0], sizes = [8, 96], strides = [1, 1]} : vector<8x128xf32> to vector<8x96xf32>
    %550 = arith.negf %549 : vector<8x96xf32>
    %551 = math.exp %550 : vector<8x96xf32>
    %cst_126 = arith.constant 1.000000e+00 : f32
    %552 = vector.broadcast %cst_126 : f32 to vector<8x96xf32>
    %553 = arith.addf %552, %551 : vector<8x96xf32>
    %554 = arith.divf %552, %553 : vector<8x96xf32>
    %555 = vector.extract_strided_slice %554 {offsets = [0, 0], sizes = [8, 32], strides = [1, 1]} : vector<8x96xf32> to vector<8x32xf32>
    %556 = vector.extract_strided_slice %554 {offsets = [0, 32], sizes = [8, 32], strides = [1, 1]} : vector<8x96xf32> to vector<8x32xf32>
    %557 = vector.extract_strided_slice %554 {offsets = [0, 64], sizes = [8, 32], strides = [1, 1]} : vector<8x96xf32> to vector<8x32xf32>
    %558 = vector.extract_strided_slice %546 {offsets = [0, 96], sizes = [8, 32], strides = [1, 1]} : vector<8x128xf32> to vector<8x32xf32>
    %559 = math.tanh %558 : vector<8x32xf32>
    %560 = arith.mulf %556, %515 : vector<8x32xf32>
    %561 = arith.mulf %555, %559 : vector<8x32xf32>
    %562 = arith.addf %560, %561 : vector<8x32xf32>
    %563 = math.tanh %562 : vector<8x32xf32>
    %564 = arith.mulf %557, %563 : vector<8x32xf32>
    %565 = vector.extract_strided_slice %548 {offsets = [0, 0], sizes = [8, 96], strides = [1, 1]} : vector<8x128xf32> to vector<8x96xf32>
    %566 = arith.negf %565 : vector<8x96xf32>
    %567 = math.exp %566 : vector<8x96xf32>
    %cst_127 = arith.constant 1.000000e+00 : f32
    %568 = vector.broadcast %cst_127 : f32 to vector<8x96xf32>
    %569 = arith.addf %568, %567 : vector<8x96xf32>
    %570 = arith.divf %568, %569 : vector<8x96xf32>
    %571 = vector.extract_strided_slice %570 {offsets = [0, 0], sizes = [8, 32], strides = [1, 1]} : vector<8x96xf32> to vector<8x32xf32>
    %572 = vector.extract_strided_slice %570 {offsets = [0, 32], sizes = [8, 32], strides = [1, 1]} : vector<8x96xf32> to vector<8x32xf32>
    %573 = vector.extract_strided_slice %570 {offsets = [0, 64], sizes = [8, 32], strides = [1, 1]} : vector<8x96xf32> to vector<8x32xf32>
    %574 = vector.extract_strided_slice %548 {offsets = [0, 96], sizes = [8, 32], strides = [1, 1]} : vector<8x128xf32> to vector<8x32xf32>
    %575 = math.tanh %574 : vector<8x32xf32>
    %576 = arith.mulf %572, %521 : vector<8x32xf32>
    %577 = arith.mulf %571, %575 : vector<8x32xf32>
    %578 = arith.addf %576, %577 : vector<8x32xf32>
    %579 = math.tanh %578 : vector<8x32xf32>
    %580 = arith.mulf %573, %579 : vector<8x32xf32>
    %581 = vector.broadcast %c7_i32_118 : i32 to vector<8x1xi32>
    %582 = arith.cmpi sgt, %0, %581 : vector<8x1xi32>
    %583 = vector.broadcast %538 : i32 to vector<8x1xi32>
    %584 = arith.cmpi sgt, %0, %583 : vector<8x1xi32>
    %585 = vector.shape_cast %582 : vector<8x1xi1> to vector<8x1xi1>
    %586 = vector.broadcast %585 : vector<8x1xi1> to vector<8x32xi1>
    %587 = arith.select %586, %564, %512 : vector<8x32xi1>, vector<8x32xf32>
    %588 = vector.shape_cast %582 : vector<8x1xi1> to vector<8x1xi1>
    %589 = vector.broadcast %588 : vector<8x1xi1> to vector<8x32xi1>
    %590 = arith.select %589, %562, %515 : vector<8x32xi1>, vector<8x32xf32>
    %591 = vector.shape_cast %584 : vector<8x1xi1> to vector<8x1xi1>
    %592 = vector.broadcast %591 : vector<8x1xi1> to vector<8x32xi1>
    %593 = arith.select %592, %580, %518 : vector<8x32xi1>, vector<8x32xf32>
    %594 = vector.shape_cast %584 : vector<8x1xi1> to vector<8x1xi1>
    %595 = vector.broadcast %594 : vector<8x1xi1> to vector<8x32xi1>
    %596 = arith.select %595, %578, %521 : vector<8x32xi1>, vector<8x32xf32>
    %cst_128 = arith.constant 0.000000e+00 : f32
    %597 = vector.shape_cast %582 : vector<8x1xi1> to vector<8x1xi1>
    %598 = vector.broadcast %597 : vector<8x1xi1> to vector<8x32xi1>
    %599 = vector.broadcast %cst_128 : f32 to vector<8x32xf32>
    %600 = arith.select %598, %564, %599 : vector<8x32xi1>, vector<8x32xf32>
    %601 = arith.index_cast %c7_i32_118 : i32 to index
    %c0_129 = arith.constant 0 : index
    %c0_130 = arith.constant 0 : index
    %602 = vector.load %arg7[%601, %c0_129, %c0_130] : memref<8x8x64xf32, #tpu.memory_space<vmem>>, vector<1x8x32xf32>
    %603 = vector.shape_cast %602 : vector<1x8x32xf32> to vector<8x32xf32>
    %604 = vector.shape_cast %600 : vector<8x32xf32> to vector<1x8x32xf32>
    tpu.vector_store %arg7[%601, %c0_129, %c0_130], %604 {strides = array<i32>} : memref<8x8x64xf32, #tpu.memory_space<vmem>>, vector<1x8x32xf32>,
    %cst_131 = arith.constant 0.000000e+00 : f32
    %605 = vector.shape_cast %584 : vector<8x1xi1> to vector<8x1xi1>
    %606 = vector.broadcast %605 : vector<8x1xi1> to vector<8x32xi1>
    %607 = vector.broadcast %cst_131 : f32 to vector<8x32xf32>
    %608 = arith.select %606, %580, %607 : vector<8x32xi1>, vector<8x32xf32>
    %609 = arith.index_cast %538 : i32 to index
    %c0_132 = arith.constant 0 : index
    %c32_133 = arith.constant 32 : index
    %610 = vector.load %arg7[%609, %c0_132, %c32_133] : memref<8x8x64xf32, #tpu.memory_space<vmem>>, vector<1x8x32xf32>
    %611 = vector.shape_cast %610 : vector<1x8x32xf32> to vector<8x32xf32>
    %612 = vector.shape_cast %608 : vector<8x32xf32> to vector<1x8x32xf32>
    tpu.vector_store %arg7[%609, %c0_132, %c32_133], %612 {strides = array<i32>} : memref<8x8x64xf32, #tpu.memory_space<vmem>>, vector<1x8x32xf32>,
    %c8_i32 = arith.constant 8 : i32
    return
  }
  func.func @transform_0(%arg0: i32) -> (i32, i32, i32) {
    %c0_i32 = arith.constant 0 : i32
    %c0_i32_0 = arith.constant 0 : i32
    %c0_i32_1 = arith.constant 0 : i32
    %c0_i32_2 = arith.constant 0 : i32
    return %c0_i32, %c0_i32_0, %c0_i32_1 : i32, i32, i32
  }
  func.func @transform_1(%arg0: i32) -> (i32, i32) {
    %c0_i32 = arith.constant 0 : i32
    %c0_i32_0 = arith.constant 0 : i32
    %c0_i32_1 = arith.constant 0 : i32
    return %c0_i32, %c0_i32_0 : i32, i32
  }
  func.func @transform_2(%arg0: i32) -> (i32, i32) {
    %c0_i32 = arith.constant 0 : i32
    %c0_i32_0 = arith.constant 0 : i32
    %c0_i32_1 = arith.constant 0 : i32
    return %c0_i32, %c0_i32_0 : i32, i32
  }
  func.func @transform_3(%arg0: i32) -> (i32, i32) {
    %c0_i32 = arith.constant 0 : i32
    %c0_i32_0 = arith.constant 0 : i32
    %c0_i32_1 = arith.constant 0 : i32
    return %c0_i32, %c0_i32_0 : i32, i32
  }
  func.func @transform_4(%arg0: i32) -> (i32, i32) {
    %c0_i32 = arith.constant 0 : i32
    %c0_i32_0 = arith.constant 0 : i32
    %c0_i32_1 = arith.constant 0 : i32
    return %c0_i32, %c0_i32_0 : i32, i32
  }
  func.func @transform_5(%arg0: i32) -> (i32, i32) {
    %c0_i32 = arith.constant 0 : i32
    %c0_i32_0 = arith.constant 0 : i32
    %c0_i32_1 = arith.constant 0 : i32
    return %c0_i32, %c0_i32_0 : i32, i32
  }
  func.func @transform_6(%arg0: i32) -> (i32, i32, i32) {
    %c0_i32 = arith.constant 0 : i32
    %c0_i32_0 = arith.constant 0 : i32
    %c0_i32_1 = arith.constant 0 : i32
    %c0_i32_2 = arith.constant 0 : i32
    return %c0_i32, %c0_i32_0, %c0_i32_1 : i32, i32, i32
  }
}

</mosaic_0001>

<bundles_post_ra>
// kernel: tpu_custom_call.1
= control target key start
LH: loop header
LB: loop body
LE: loop exit
PB: predicated region body
PF: predicated region fallthrough
CT: control target
= control target key end

     0   :  { %11 = vsyncpa [#allocation4], 0  ;;  %s2435_s0 = inlined_call_operand.hbm [shape: f32[8,8,32], index: 0, kind: input, shape index: {}]   ;;  %s2436_s1 = inlined_call_operand.vmem [shape: s32[8,1], index: 1, kind: input, shape index: {}]   ;;  %s2437_s2 = inlined_call_operand.hbm [shape: f32[32,256], index: 2, kind: input, shape index: {}]   ;;  %s2438_s3 = inlined_call_operand.hbm [shape: f32[32,128], index: 3, kind: input, shape index: {}]   ;;  %s2439_s4 = inlined_call_operand.hbm [shape: f32[32,128], index: 4, kind: input, shape index: {}]   ;;  %s2440_s5 = inlined_call_operand.vmem [shape: f32[1,256], index: 5, kind: input, shape index: {}]   ;;  %s2441_s6 = inlined_call_operand.hbm [shape: f32[8,8,64], index: 6, kind: output, shape index: {}]  }
   0x1   :  { %12 = vsyncpa [#allocation7], 0 }
   0x2   :  { %13 = vsyncpa [#allocation10], 0  ;;  %s34_s23 = sshll.u32 %s2437_s2, 4  ;;  %s35_s23 = int_to_ptr.hbm [resolvable:$true] %s34_s23 }
   0x3   :  { %14 = vsyncpa [#allocation5], 0  ;;  %s1787_s24 = smov [#allocation6]   ;;  %s19_s28 = sshll.u32 %s2435_s0, 4  ;;  %s20_s28 = int_to_ptr.hbm [resolvable:$true] %s19_s28 }
   0x4   :  { %s36_s25 = sshll.u32 %s1787_s24, 4  ;;  %s1788_s29 = smov 256   ;;  %s37_s25 = int_to_ptr.vmem [resolvable:$true] %s36_s25 }
   0x5   :  { %s1789_s30 = smov 16   ;;  %s1790_s7 = smov [#allocation3]  }
   0x6   :  { %42 = dma.hbm_to_vmem [thread:$0]  %s35_s23, 1024, %s37_s25, [#allocation7], %s1788_s29, %s1788_s29, %s1789_s30  }
   0x7   :  { %s21_s8 = sshll.u32 %s1790_s7, 4  ;;  %s1791_s9 = smov 128   ;;  %s22_s8 = int_to_ptr.vmem [resolvable:$true] %s21_s8 }
   0x8   :  { %s1792_s10 = smov 8   ;;  %s47_s12 = sshll.u32 %s2438_s3, 4  ;;  %s48_s12 = int_to_ptr.hbm [resolvable:$true] %s47_s12 }
   0x9   :  { %27 = dma.hbm_to_vmem [thread:$0]  %s20_s28, 1024, %s22_s8, [#allocation4], %s1791_s9, %s1791_s9, %s1792_s10  }
   0xa   :  { %s1793_s13 = smov [#allocation8]   ;;  %s60_s16 = sshll.u32 %s2439_s4, 4  ;;  %s61_s16 = int_to_ptr.hbm [resolvable:$true] %s60_s16 }
   0xb   :  { %s49_s0 = sshll.u32 %s1793_s13, 4  ;;  %s1794_s17 = smov [#allocation9]   ;;  %s50_s0 = int_to_ptr.vmem [resolvable:$true] %s49_s0 }
   0xc   :  { %55 = dma.hbm_to_vmem [thread:$0]  %s48_s12, 512, %s50_s0, [#allocation7], %s1791_s9, %s1791_s9, %s1792_s10  }
   0xd   :  { %s62_s18 = sshll.u32 %s1794_s17, 4  ;;  %s63_s18 = int_to_ptr.vmem [resolvable:$true] %s62_s18 }
   0xe   :  { %68 = dma.hbm_to_vmem [thread:$0]  %s61_s16, 512, %s63_s18, [#allocation10], %s1791_s9, %s1791_s9, %s1792_s10  }
   0xf   :  { %1779 = dma.done.wait [#allocation4], 1024  }
  0x10   :  { %1780 = vsyncadd [#allocation4], 4294966272 }
  0x11   :  { %1781 = dma.done.wait [#allocation7], 1536  }
  0x12   :  { %1782 = vsyncadd [#allocation7], 4294965760 }
  0x13   :  { %1783 = dma.done.wait [#allocation10], 512  }
  0x14   :  { %1784 = vsyncadd [#allocation10], 4294966784  ;;  %v111_v0 = vld [vmem:[#allocation6 + $0x38] sm:$0xff]  ;;  %v109_v2 = vld [vmem:[#allocation6 + $0x28] sm:$0xff]  ;;  %vm118_vm0 = vcmask 261120   ;;  %v1795_v13 = vmov 0.0  }
  0x15   :  { %v1857_v1 = vld [vmem:[#allocation8 + $0x18] sm:$0xff]  ;;  %196 = vmatpush.msra.mxu1 %v111_v0  ;;  %v1860_v3 = vld [vmem:[#allocation8 + $0x10] sm:$0xff]  ;;  %v1862_v6 = vld [vmem:[#allocation8 + $0x8] sm:$0xff]  ;;  %s1796_s19 = smov 32   ;;  %v1797_v56 = vmov 0   ;;  %s1799_s21 = smov 96  }
  0x16   :  { %259 = vmatpush.msra.mxu2 %v1857_v1  ;;  %v110_v4 = vld [vmem:[#allocation6 + $0x30] sm:$0xff]  ;;  %v107_v5 = vld [vmem:[#allocation6 + $0x18] sm:$0xff]  ;;  %v108_v7 = vld [vmem:[#allocation6 + $0x20] sm:$0xff]  ;;  %1520 = vset.pattern.permute.xlu0 %v1797_v56  ;;  %s1800_s22 = smov [#allocation11]   ;;  %s1445_s26 = sshll.u32 %s2441_s6, 4  ;;  %s1446_s26 = int_to_ptr.hbm [resolvable:$true] %s1445_s26 }
  0x17   :  { %155 = vmatpush.msra.mxu0 %v110_v4  ;;  %197 = vmatpush.msra.mxu1 %v109_v2  ;;  %v106_v8 = vld [vmem:[#allocation6 + $0x10] sm:$0xff]  ;;  %v105_v9 = vld [vmem:[#allocation6 + $0x8] sm:$0xff]  ;;  %v1865_v10 = vld [vmem:[#allocation8] sm:$0xff]  ;;  %s1443_s23 = sshll.u32 %s1800_s22, 4  ;;  %s1444_s23 = int_to_ptr.vmem [resolvable:$true] %s1443_s23 }
  0x18   :  { %260 = vmatpush.msra.mxu2 %v1860_v3  ;;  %v96_v11 = vld [vmem:[#allocation3] sm:$0xff]  ;;  %v97_v14 = vld [vmem:[#allocation3 + $0x8] sm:$0xff]  ;;  %v1876_v15 = vld [vmem:[#allocation9 + $0x18] sm:$0xff]  ;;  %1521 = vset.pattern.permute.xlu1 %v1797_v56 }
  0x19   :  { %156 = vmatpush.msra.mxu0 %v108_v7  ;;  %198 = vmatpush.msra.mxu1 %v107_v5  ;;  %v104_v12 = vld [vmem:[#allocation6] sm:$0xff]  ;;  %v1878_v16 = vld [vmem:[#allocation9 + $0x10] sm:$0xff]  ;;  %v1888_v18 = vld [vmem:[#allocation9 + $0x8] sm:$0xff] }
  0x1a   :  { %261 = vmatpush.msra.mxu2 %v1862_v6  ;;  %280 = vmatpush.msra.mxu3 %v1876_v15  ;;  %v98_v17 = vld [vmem:[#allocation3 + $0x10] sm:$0xff]  ;;  %v1890_v19 = vld [vmem:[#allocation9] sm:$0xff]  ;;  %v99_v20 = vld [vmem:[#allocation3 + $0x18] sm:$0xff] }
  0x1b   :  { %157 = vmatpush.msra.mxu0 %v106_v8  ;;  %199 = vmatpush.msra.mxu1 %v105_v9  ;;  %v100_v21 = vld [vmem:[#allocation3 + $0x20] sm:$0xff]  ;;  %v101_v22 = vld [vmem:[#allocation3 + $0x28] sm:$0xff]  ;;  %v102_v23 = vld [vmem:[#allocation3 + $0x30] sm:$0xff] }
  0x1c   :  { %262 = vmatpush.msra.mxu2 %v1865_v10  ;;  %1468 = vmatmul.msk.f32.vlgmr.msra.gmra.mxu1 %vm118_vm0, %v96_v11  ;;  %v103_v24 = vld [vmem:[#allocation3 + $0x38] sm:$0xff]  ;;  %v112_v25 = vld [vmem:[%s2440_s5] sm:$0x3] }
  0x1d   :  { %263 = vmatmul.f32.vlgmr.msra.gmra.mxu2 %v1795_v13  ;;  %158 = vmatpush.msra.mxu0 %v104_v12  ;;  %v115_v26 = vperm.slane %v112_v25, 1  ;;  %v1916_v27 = vperm.slane %v112_v25, 0  ;;  %v1938_v55 = vld [vmem:[%s2436_s1] sm:$0xff]  ;;  %s1798_s1 = smov 64  }
  0x1e   :  { %409 = vmatpush.msrb.mxu2 %v1857_v1  ;;  %1460 = vmatmul.msk.f32.vlgmr.msra.gmra.mxu0 %vm118_vm0, %v96_v11  ;;  %vm363_vm1 = vcmp.gt.s32.totalorder %v1938_v55, 0  ;;  %vm364_vm10 = vcmp.gt.s32.totalorder %v1938_v55, 7 }
  0x1f   :  { %281 = vmatpush.msra.mxu3 %v1878_v16  ;;  %v365_v57 = vsel %vm363_vm1, 1, %v1797_v56  ;;  %1522 = vset.pattern.permute.xlu2 %v1797_v56 }
  0x20   :  { %410 = vmatpush.msrb.mxu2 %v1860_v3 }
  0x21   :  { %282 = vmatpush.msra.mxu3 %v1888_v18 }
  0x22   :  { %411 = vmatpush.msrb.mxu2 %v1862_v6 }
  0x23   :  { %283 = vmatpush.msra.mxu3 %v1890_v19 }
  0x24   :  { %412 = vmatpush.msrb.mxu2 %v1865_v10  ;;  %1469 = vmatmul.msk.f32.gmra.mxu1 %vm118_vm0, %v97_v14 }
  0x25   :  { %284 = vmatmul.f32.vlgmr.msra.gmra.mxu3 %v1795_v13 }
  0x26   :  { %568 = vmatpush.msra.mxu2 %v1857_v1  ;;  %1461 = vmatmul.msk.f32.gmra.mxu0 %vm118_vm0, %v97_v14 }
  0x27   :  { %434 = vmatpush.msrb.mxu3 %v1876_v15 }
  0x28   :  { %569 = vmatpush.msra.mxu2 %v1860_v3 }
  0x29   :  { %435 = vmatpush.msrb.mxu3 %v1878_v16 }
  0x2a   :  { %570 = vmatpush.msra.mxu2 %v1862_v6 }
  0x2b   :  { %436 = vmatpush.msrb.mxu3 %v1888_v18 }
  0x2c   :  { %571 = vmatpush.msra.mxu2 %v1865_v10  ;;  %1470 = vmatmul.msk.f32.gmra.mxu1 %vm118_vm0, %v98_v17 }
  0x2d   :  { %437 = vmatpush.msrb.mxu3 %v1890_v19 }
  0x2e   :  { %1462 = vmatmul.msk.f32.gmra.mxu0 %vm118_vm0, %v98_v17 }
  0x2f   :  { %594 = vmatpush.msra.mxu3 %v1876_v15 }
  0x31   :  { %595 = vmatpush.msra.mxu3 %v1878_v16 }
  0x33   :  { %596 = vmatpush.msra.mxu3 %v1888_v18 }
  0x34   :  { %1471 = vmatmul.msk.f32.gmra.mxu1 %vm118_vm0, %v99_v20 }
  0x35   :  { %597 = vmatpush.msra.mxu3 %v1890_v19 }
  0x36   :  { %1463 = vmatmul.msk.f32.gmra.mxu0 %vm118_vm0, %v99_v20 }
  0x3c   :  { %1472 = vmatmul.msk.f32.gmra.mxu1 %vm118_vm0, %v100_v21 }
  0x3e   :  { %1464 = vmatmul.msk.f32.gmra.mxu0 %vm118_vm0, %v100_v21 }
  0x44   :  { %1473 = vmatmul.msk.f32.gmra.mxu1 %vm118_vm0, %v101_v22 }
  0x46   :  { %1465 = vmatmul.msk.f32.gmra.mxu0 %vm118_vm0, %v101_v22 }
  0x4c   :  { %1474 = vmatmul.msk.f32.gmra.mxu1 %vm118_vm0, %v102_v23 }
  0x4e   :  { %1466 = vmatmul.msk.f32.gmra.mxu0 %vm118_vm0, %v102_v23 }
  0x54   :  { %1475 = vmatmul.msk.f32.gmra.mxu1 %vm118_vm0, %v103_v24 }
  0x56   :  { %1467 = vmatmul.msk.f32.gmra.mxu0 %vm118_vm0, %v103_v24 }
  0x99   :  { %v201_v28 = vpop.f32.mrf.mxu1 }
  0x9a   :  { %v1918_v29 = vadd.f32 %v201_v28, %v115_v26 }
  0x9b   :  { %v160_v30 = vpop.f32.mrf.mxu0 }
  0x9c   :  { %v161_v31 = vadd.f32 %v160_v30, %v1916_v27 }
  0xa0   :  { %v264_v32 = vpop.f32.mrf.mxu2 }
  0xa1   :  { %v267_v33 = vadd.f32 %v264_v32, %v161_v31  ;;  %v204_v34 = vpop.f32.mrf.mxu1  ;;  %v372_v31 = vsel %vm364_vm10, 1, %v1797_v56 }
  0xa2   :  { %v1921_v35 = vadd.f32 %v204_v34, %v115_v26 }
  0xa3   :  { %1523 = vtanh.f32 %v267_v33  ;;  %v1476_v52 = vmul.f32 -1.442695, %v267_v33 }
  0xa8   :  { %v285_v48 = vpop.f32.mrf.mxu3 }
  0xa9   :  { %v1524_v36 = vpop.eup %1523  ;;  %v207_v37 = vpop.f32.mrf.mxu1 }
  0xaa   :  { %311 = vrot.lane.b32.xlu0 %v1524_v36, %s1796_s19  ;;  %v1924_v38 = vadd.f32 %v207_v37, %v115_v26 }
  0xb1   :  { %v210_v39 = vpop.f32.mrf.mxu1 }
  0xb2   :  { %v1926_v40 = vadd.f32 %v210_v39, %v115_v26 }
  0xb9   :  { %v213_v41 = vpop.f32.mrf.mxu1 }
  0xba   :  { %v1928_v42 = vadd.f32 %v213_v41, %v115_v26 }
  0xc1   :  { %v216_v43 = vpop.f32.mrf.mxu1 }
  0xc2   :  { %v1930_v44 = vadd.f32 %v216_v43, %v115_v26 }
  0xc9   :  { %v219_v45 = vpop.f32.mrf.mxu1 }
  0xca   :  { %v1932_v46 = vadd.f32 %v219_v45, %v115_v26 }
  0xd1   :  { %v222_v47 = vpop.f32.mrf.mxu1 }
  0xd2   :  { %v223_v49 = vadd.f32 %v222_v47, %v115_v26 }
  0xd4   :  { %v288_v50 = vadd.f32 %v285_v48, %v223_v49 }
  0xd6   :  { %1525 = vtanh.f32 %v288_v50  ;;  %v1477_v9 = vmul.f32 -1.442695, %v288_v50 }
  0xd7   :  { %1527 = vpow2.f32 %v1476_v52 }
  0xdc   :  { %v1526_v51 = vpop.eup %1525 }
  0xdd   :  { %348 = vrot.lane.b32.xlu0 %v1526_v51, %s1796_s19  ;;  %v1528_v53 = vpop.eup %1527 }
  0xde   :  { %v292_v54 = vadd.f32 1.0, %v1528_v53 }
  0xe0   :  { %1529 = vrcp.f32 %v292_v54  ;;  %vm298_vm2 = vweird.f32 %v292_v54  ;;  %v304_v62 = vand.u32 2147483648, %v292_v54  ;;  %v302_v0 = vand.u32 2147483647, %v292_v54 }
  0xe1   :  { %1531 = vpow2.f32 %v1477_v9 }
  0xe2   :  { %v305_v2 = vor.u32 1.1754944e-38, %v304_v62  ;;  %vm303_vm5 = vcmp.eq.f32.partialorder %v302_v0, 8.507059e+37 }
  0xe5   :  { %367 = vperm.xlu0 %1520, %v365_v57  }
  0xe6   :  { %v1530_v58 = vpop.eup %1529 }
  0xe7   :  { %v294_v59 = vmul.f32 %v1530_v58, %v292_v54  ;;  %vm299_vm3 = vweird.f32 %v1530_v58  ;;  %v1532_v11 = vpop.eup %1531 }
  0xe8   :  { %vm300_vm4 = vmor %vm298_vm2, %vm299_vm3  ;;  %v329_v12 = vadd.f32 1.0, %v1532_v11 }
  0xe9   :  { %v295_v60 = vsub.f32 1.0, %v294_v59 }
  0xea   :  { %1533 = vrcp.f32 %v329_v12  ;;  %v341_v22 = vand.u32 2147483648, %v329_v12  ;;  %vm335_vm7 = vweird.f32 %v329_v12  ;;  %v339_v23 = vand.u32 2147483647, %v329_v12 }
  0xeb   :  { %v296_v61 = vmul.f32 %v1530_v58, %v295_v60 }
  0xec   :  { %v342_v25 = vor.u32 1.1754944e-38, %v341_v22  ;;  %vm340_vm9 = vcmp.eq.f32.partialorder %v339_v23, 8.507059e+37 }
  0xed   :  { %v297_v63 = vadd.f32 %v1530_v58, %v296_v61 }
  0xef   :  { %v301_v4 = vsel %vm300_vm4, %v1530_v58, %v297_v63  ;;  %v163_v58 = vpop.f32.mrf.mxu0 }
  0xf0   :  { %v306_v7 = vsel %vm303_vm5, %v305_v2, %v301_v4  ;;  %v1534_v13 = vpop.eup %1533  ;;  %v164_v59 = vadd.f32 %v163_v58, %v1916_v27 }
  0xf1   :  { %v331_v14 = vmul.f32 %v1534_v13, %v329_v12  ;;  %vm336_vm6 = vweird.f32 %v1534_v13  ;;  %v309_v32 = vmul.f32 0.0, %v306_v7 }
  0xf2   :  { %vm337_vm8 = vmor %vm335_vm7, %vm336_vm6  ;;  %vm517_vm6 = vcmp.gt.s32.totalorder %v1938_v55, 1  ;;  %vm518_vm7 = vcmp.gt.s32.totalorder %v1938_v55, 6 }
  0xf3   :  { %v332_v17 = vsub.f32 1.0, %v331_v14 }
  0xf5   :  { %v333_v20 = vmul.f32 %v1534_v13, %v332_v17 }
  0xf7   :  { %v334_v21 = vadd.f32 %v1534_v13, %v333_v20 }
  0xf9   :  { %v338_v24 = vsel %vm337_vm8, %v1534_v13, %v334_v21 }
  0xfa   :  { %v343_v26 = vsel %vm340_vm9, %v342_v25, %v338_v24 }
  0xfb   :  { %v346_v37 = vmul.f32 0.0, %v343_v26 }
 0x11c   :  { %v312_v5 = vpop.permute.xlu0 %311 }
 0x11d   :  { %v314_v8 = vmul.f32 %v312_v5, %v306_v7 }
 0x11f   :  { %316 = vrot.lane.b32.xlu1 %v314_v8, %s1796_s19 }
 0x14f   :  { %v349_v28 = vpop.permute.xlu0 %348 }
 0x150   :  { %v351_v30 = vmul.f32 %v349_v28, %v343_v26 }
 0x152   :  { %353 = vrot.lane.b32.xlu1 %v351_v30, %s1796_s19 }
 0x157   :  { %v1957_v45 = vpop.permute.xlu0 %367 }
 0x158   :  { %vm369_vm11 = vcmp.eq.s32.totalorder %v1957_v45, 1 }
 0x15a   :  { %374 = vperm.xlu1 %1521, %v372_v31  }
 0x191   :  { %v317_v33 = vpop.permute.xlu1 %316 }
 0x192   :  { %v1949_v34 = vadd.f32 %v317_v33, %v309_v32 }
 0x194   :  { %1535 = vtanh.f32 %v1949_v34 }
 0x19a   :  { %v1536_v36 = vpop.eup %1535 }
 0x19b   :  { %322 = vrot.lane.b32.xlu2 %v1536_v36, %s1796_s19 }
 0x1c4   :  { %v354_v39 = vpop.permute.xlu1 %353 }
 0x1c5   :  { %v1953_v41 = vadd.f32 %v354_v39, %v346_v37 }
 0x1c7   :  { %1537 = vtanh.f32 %v1953_v41 }
 0x1cc   :  { %v1966_v50 = vpop.permute.xlu1 %374 }
 0x1cd   :  { %v1538_v43 = vpop.eup %1537  ;;  %vm376_vm12 = vcmp.eq.s32.totalorder %v1966_v50, 1 }
 0x1ce   :  { %359 = vrot.lane.b32.xlu2 %v1538_v43, %s1796_s19 }
 0x1f5   :  { %v323_v47 = vpop.permute.xlu2 %322 }
 0x1f6   :  { %v325_v48 = vmul.f32 %v323_v47, %v306_v7 }
 0x1f8   :  { %v1962_v49 = vsel %vm369_vm11, %v325_v48, 0.0 }
 0x1f9   :  { %380 = vrot.lane.b32.xlu2 %v1962_v49, %s1798_s1 }
 0x228   :  { %v360_v51 = vpop.permute.xlu2 %359 }
 0x229   :  { %v362_v52 = vmul.f32 %v360_v51, %v343_v26 }
 0x22b   :  { %v1971_v53 = vsel %vm376_vm12, %v362_v52, 0.0  ;;  %v519_v52 = vsel %vm517_vm6, 1, %v1797_v56  ;;  %vm678_vm6 = vcmp.gt.s32.totalorder %v1938_v55, 5 }
 0x22c   :  { %418 = vrot.lane.b32.xlu1 %v1971_v53, %s1798_s1 }
 0x253   :  { %v381_v54 = vpop.permute.xlu2 %380 }
 0x254   :  { %383 = vst.msk [vmem:[#allocation11] sm:$0xff] %vm118_vm0, %v381_v54  ;;  %1478 = vmatmul.msk.f32.vlgmr.msrb.gmra.mxu2 %vm118_vm0, %v381_v54  ;;  %v1997_v54 = vsel %vm369_vm11, %v1949_v34, 0.0  ;;  %v2009_v34 = vsel %vm376_vm12, %v1953_v41, 0.0 }
 0x255   :  { %728 = vmatpush.msrb.mxu2 %v1857_v1 }
 0x257   :  { %729 = vmatpush.msrb.mxu2 %v1860_v3 }
 0x259   :  { %730 = vmatpush.msrb.mxu2 %v1862_v6 }
 0x25b   :  { %731 = vmatpush.msrb.mxu2 %v1865_v10 }
 0x29e   :  { %v419_v57 = vpop.permute.xlu1 %418 }
 0x29f   :  { %1479 = vmatmul.msk.f32.vlgmr.msrb.gmra.mxu3 %vm118_vm0, %v419_v57 }
 0x2a0   :  { %754 = vmatpush.msrb.mxu3 %v1876_v15 }
 0x2a2   :  { %755 = vmatpush.msrb.mxu3 %v1878_v16 }
 0x2a4   :  { %756 = vmatpush.msrb.mxu3 %v1888_v18 }
 0x2a6   :  { %757 = vmatpush.msrb.mxu3 %v1890_v19 }
 0x2d7   :  { %v414_v60 = vpop.f32.mrf.mxu2 }
 0x2d8   :  { %v417_v61 = vadd.f32 %v414_v60, %v164_v59 }
 0x2da   :  { %1539 = vtanh.f32 %v417_v61  ;;  %v1480_v63 = vmul.f32 -1.442695, %v417_v61  ;;  %v526_v61 = vsel %vm518_vm7, 1, %v1797_v56 }
 0x2dc   :  { %1541 = vpow2.f32 %v1480_v63 }
 0x2e0   :  { %v1540_v62 = vpop.eup %1539 }
 0x2e1   :  { %465 = vrot.lane.b32.xlu2 %v1540_v62, %s1796_s19 }
 0x2e2   :  { %v1542_v0 = vpop.eup %1541 }
 0x2e3   :  { %v446_v2 = vadd.f32 1.0, %v1542_v0 }
 0x2e5   :  { %1543 = vrcp.f32 %v446_v2  ;;  %v458_v14 = vand.u32 2147483648, %v446_v2  ;;  %vm452_vm14 = vweird.f32 %v446_v2  ;;  %v456_v17 = vand.u32 2147483647, %v446_v2 }
 0x2e7   :  { %v459_v21 = vor.u32 1.1754944e-38, %v458_v14  ;;  %vm457_vm1 = vcmp.eq.f32.partialorder %v456_v17, 8.507059e+37  ;;  %v166_v14 = vpop.f32.mrf.mxu0 }
 0x2e8   :  { %v167_v17 = vadd.f32 %v166_v14, %v1916_v27 }
 0x2eb   :  { %v1544_v7 = vpop.eup %1543 }
 0x2ec   :  { %v448_v8 = vmul.f32 %v1544_v7, %v446_v2  ;;  %vm453_vm13 = vweird.f32 %v1544_v7 }
 0x2ed   :  { %vm454_vm15 = vmor %vm452_vm14, %vm453_vm13 }
 0x2ee   :  { %v449_v11 = vsub.f32 1.0, %v448_v8 }
 0x2f0   :  { %v450_v12 = vmul.f32 %v1544_v7, %v449_v11 }
 0x2f2   :  { %v451_v13 = vadd.f32 %v1544_v7, %v450_v12 }
 0x2f4   :  { %v455_v20 = vsel %vm454_vm15, %v1544_v7, %v451_v13 }
 0x2f5   :  { %v460_v23 = vsel %vm457_vm1, %v459_v21, %v455_v20 }
 0x2f6   :  { %v463_v57 = vmul.f32 %v460_v23, %v1997_v54 }
 0x322   :  { %v439_v4 = vpop.f32.mrf.mxu3 }
 0x323   :  { %v442_v5 = vadd.f32 %v439_v4, %v1932_v46 }
 0x325   :  { %1545 = vtanh.f32 %v442_v5  ;;  %v1481_v24 = vmul.f32 -1.442695, %v442_v5 }
 0x327   :  { %1547 = vpow2.f32 %v1481_v24 }
 0x32b   :  { %v1546_v9 = vpop.eup %1545 }
 0x32c   :  { %502 = vrot.lane.b32.xlu0 %v1546_v9, %s1796_s19 }
 0x32d   :  { %v1548_v25 = vpop.eup %1547 }
 0x32e   :  { %v483_v26 = vadd.f32 1.0, %v1548_v25 }
 0x330   :  { %1549 = vrcp.f32 %v483_v26  ;;  %v495_v36 = vand.u32 2147483648, %v483_v26  ;;  %vm489_vm3 = vweird.f32 %v483_v26  ;;  %v493_v37 = vand.u32 2147483647, %v483_v26 }
 0x332   :  { %v496_v43 = vor.u32 1.1754944e-38, %v495_v36  ;;  %vm494_vm5 = vcmp.eq.f32.partialorder %v493_v37, 8.507059e+37 }
 0x336   :  { %v1550_v28 = vpop.eup %1549 }
 0x337   :  { %v485_v30 = vmul.f32 %v1550_v28, %v483_v26  ;;  %vm490_vm2 = vweird.f32 %v1550_v28 }
 0x338   :  { %vm491_vm4 = vmor %vm489_vm3, %vm490_vm2 }
 0x339   :  { %v486_v31 = vsub.f32 1.0, %v485_v30 }
 0x33b   :  { %v466_v22 = vpop.permute.xlu2 %465  ;;  %v487_v32 = vmul.f32 %v1550_v28, %v486_v31 }
 0x33c   :  { %v468_v46 = vmul.f32 %v466_v22, %v460_v23 }
 0x33d   :  { %v488_v33 = vadd.f32 %v1550_v28, %v487_v32 }
 0x33e   :  { %470 = vrot.lane.b32.xlu1 %v468_v46, %s1796_s19 }
 0x33f   :  { %v492_v39 = vsel %vm491_vm4, %v1550_v28, %v488_v33 }
 0x340   :  { %v497_v47 = vsel %vm494_vm5, %v496_v43, %v492_v39  ;;  %vm677_vm5 = vcmp.gt.s32.totalorder %v1938_v55, 2 }
 0x341   :  { %v500_v62 = vmul.f32 %v497_v47, %v2009_v34 }
 0x39e   :  { %v503_v48 = vpop.permute.xlu0 %502 }
 0x39f   :  { %v505_v51 = vmul.f32 %v503_v48, %v497_v47 }
 0x3a1   :  { %507 = vrot.lane.b32.xlu2 %v505_v51, %s1796_s19 }
 0x3a9   :  { %521 = vperm.xlu2 %1522, %v519_v52  }
 0x3b0   :  { %v471_v58 = vpop.permute.xlu1 %470 }
 0x3b1   :  { %v2000_v59 = vadd.f32 %v471_v58, %v463_v57 }
 0x3b3   :  { %1551 = vtanh.f32 %v2000_v59 }
 0x3b9   :  { %v1552_v60 = vpop.eup %1551 }
 0x3ba   :  { %476 = vrot.lane.b32.xlu0 %v1552_v60, %s1796_s19 }
 0x3c2   :  { %528 = vperm.xlu0 %1520, %v526_v61  }
 0x3fb   :  { %v508_v63 = vpop.permute.xlu2 %507 }
 0x3fc   :  { %v2012_v0 = vadd.f32 %v508_v63, %v500_v62 }
 0x3fe   :  { %1553 = vtanh.f32 %v2012_v0 }
 0x403   :  { %v2016_v4 = vpop.permute.xlu2 %521 }
 0x404   :  { %v1554_v2 = vpop.eup %1553  ;;  %vm523_vm8 = vcmp.eq.s32.totalorder %v2016_v4, 1 }
 0x405   :  { %513 = vrot.lane.b32.xlu1 %v1554_v2, %s1796_s19 }
 0x42c   :  { %v477_v5 = vpop.permute.xlu0 %476 }
 0x42d   :  { %v2018_v7 = vmul.f32 %v477_v5, %v460_v23 }
 0x42f   :  { %v2025_v41 = vsel %vm523_vm8, %v2018_v7, %v1962_v49 }
 0x430   :  { %552 = vrot.lane.b32.xlu1 %v2025_v41, %s1798_s1 }
 0x434   :  { %v2029_v8 = vpop.permute.xlu0 %528 }
 0x435   :  { %vm530_vm9 = vcmp.eq.s32.totalorder %v2029_v8, 1 }
 0x477   :  { %v514_v9 = vpop.permute.xlu1 %513 }
 0x478   :  { %v2031_v11 = vmul.f32 %v514_v9, %v497_v47 }
 0x47a   :  { %v2038_v12 = vsel %vm530_vm9, %v2031_v11, %v1971_v53  ;;  %v540_v4 = vsel %vm530_vm9, %v2031_v11, 0.0 }
 0x47b   :  { %578 = vrot.lane.b32.xlu2 %v2038_v12, %s1798_s1 }
 0x4a2   :  { %v553_v49 = vpop.permute.xlu1 %552 }
 0x4a3   :  { %1482 = vmatmul.msk.f32.vlgmr.msra.gmra.mxu2 %vm118_vm0, %v553_v49 }
 0x4a4   :  { %886 = vmatpush.msra.mxu2 %v1857_v1 }
 0x4a6   :  { %887 = vmatpush.msra.mxu2 %v1860_v3 }
 0x4a8   :  { %888 = vmatpush.msra.mxu2 %v1862_v6 }
 0x4aa   :  { %889 = vmatpush.msra.mxu2 %v1865_v10 }
 0x4d5   :  { %v579_v13 = vpop.permute.xlu2 %578 }
 0x4d6   :  { %1483 = vmatmul.msk.f32.vlgmr.msra.gmra.mxu3 %vm118_vm0, %v579_v13 }
 0x4d7   :  { %912 = vmatpush.msra.mxu3 %v1876_v15 }
 0x4d9   :  { %913 = vmatpush.msra.mxu3 %v1878_v16 }
 0x4db   :  { %914 = vmatpush.msra.mxu3 %v1888_v18 }
 0x4dd   :  { %915 = vmatpush.msra.mxu3 %v1890_v19 }
 0x526   :  { %v573_v20 = vpop.f32.mrf.mxu2 }
 0x527   :  { %v576_v21 = vadd.f32 %v573_v20, %v167_v17 }
 0x529   :  { %1555 = vtanh.f32 %v576_v21  ;;  %v1484_v25 = vmul.f32 -1.442695, %v576_v21  ;;  %v679_v21 = vsel %vm677_vm5, 1, %v1797_v56 }
 0x52f   :  { %v1556_v22 = vpop.eup %1555 }
 0x530   :  { %625 = vrot.lane.b32.xlu0 %v1556_v22, %s1796_s19  ;;  %v2064_v22 = vsel %vm523_vm8, %v2000_v59, %v1997_v54  ;;  %v2077_v54 = vsel %vm530_vm9, %v2012_v0, %v2009_v34 }
 0x559   :  { %v599_v23 = vpop.f32.mrf.mxu3 }
 0x55a   :  { %v602_v46 = vadd.f32 %v599_v23, %v1930_v44 }
 0x55c   :  { %1557 = vtanh.f32 %v602_v46  ;;  %v1485_v52 = vmul.f32 -1.442695, %v602_v46 }
 0x55d   :  { %1559 = vpow2.f32 %v1484_v25 }
 0x562   :  { %v1558_v24 = vpop.eup %1557 }
 0x563   :  { %662 = vrot.lane.b32.xlu1 %v1558_v24, %s1796_s19  ;;  %v1560_v26 = vpop.eup %1559 }
 0x564   :  { %v606_v28 = vadd.f32 1.0, %v1560_v26  ;;  %v686_v26 = vsel %vm678_vm6, 1, %v1797_v56  ;;  %vm837_vm6 = vcmp.gt.s32.totalorder %v1938_v55, 3 }
 0x566   :  { %1561 = vrcp.f32 %v606_v28  ;;  %v618_v37 = vand.u32 2147483648, %v606_v28  ;;  %vm612_vm13 = vweird.f32 %v606_v28  ;;  %v616_v39 = vand.u32 2147483647, %v606_v28 }
 0x567   :  { %1563 = vpow2.f32 %v1485_v52 }
 0x568   :  { %v619_v43 = vor.u32 1.1754944e-38, %v618_v37  ;;  %vm617_vm15 = vcmp.eq.f32.partialorder %v616_v39, 8.507059e+37 }
 0x56c   :  { %v1562_v30 = vpop.eup %1561 }
 0x56d   :  { %v608_v31 = vmul.f32 %v1562_v30, %v606_v28  ;;  %vm613_vm10 = vweird.f32 %v1562_v30  ;;  %v1564_v57 = vpop.eup %1563 }
 0x56e   :  { %vm614_vm14 = vmor %vm612_vm13, %vm613_vm10  ;;  %v643_v58 = vadd.f32 1.0, %v1564_v57 }
 0x56f   :  { %v609_v32 = vsub.f32 1.0, %v608_v31 }
 0x570   :  { %1565 = vrcp.f32 %v643_v58  ;;  %v655_v5 = vand.u32 2147483648, %v643_v58  ;;  %vm649_vm2 = vweird.f32 %v643_v58  ;;  %v653_v9 = vand.u32 2147483647, %v643_v58 }
 0x571   :  { %v610_v33 = vmul.f32 %v1562_v30, %v609_v32 }
 0x572   :  { %v656_v13 = vor.u32 1.1754944e-38, %v655_v5  ;;  %vm654_vm4 = vcmp.eq.f32.partialorder %v653_v9, 8.507059e+37 }
 0x573   :  { %v611_v36 = vadd.f32 %v1562_v30, %v610_v33 }
 0x575   :  { %v615_v44 = vsel %vm614_vm14, %v1562_v30, %v611_v36 }
 0x576   :  { %v620_v47 = vsel %vm617_vm15, %v619_v43, %v615_v44  ;;  %v1566_v60 = vpop.eup %1565 }
 0x577   :  { %v645_v61 = vmul.f32 %v1566_v60, %v643_v58  ;;  %vm650_vm1 = vweird.f32 %v1566_v60  ;;  %v623_v23 = vmul.f32 %v620_v47, %v2064_v22 }
 0x578   :  { %vm651_vm3 = vmor %vm649_vm2, %vm650_vm1 }
 0x579   :  { %v646_v62 = vsub.f32 1.0, %v645_v61 }
 0x57b   :  { %v647_v63 = vmul.f32 %v1566_v60, %v646_v62 }
 0x57d   :  { %v648_v2 = vadd.f32 %v1566_v60, %v647_v63 }
 0x57f   :  { %v652_v49 = vsel %vm651_vm3, %v1566_v60, %v648_v2 }
 0x580   :  { %v657_v17 = vsel %vm654_vm4, %v656_v13, %v652_v49 }
 0x581   :  { %v660_v59 = vmul.f32 %v657_v17, %v2077_v54 }
 0x5a2   :  { %v626_v48 = vpop.permute.xlu0 %625 }
 0x5a3   :  { %v628_v51 = vmul.f32 %v626_v48, %v620_v47 }
 0x5a5   :  { %630 = vrot.lane.b32.xlu2 %v628_v51, %s1796_s19 }
 0x5d5   :  { %v663_v14 = vpop.permute.xlu1 %662 }
 0x5d6   :  { %v665_v20 = vmul.f32 %v663_v14, %v657_v17 }
 0x5d8   :  { %667 = vrot.lane.b32.xlu0 %v665_v20, %s1796_s19 }
 0x5e0   :  { %681 = vperm.xlu0 %1520, %v679_v21  }
 0x5ff   :  { %v631_v46 = vpop.permute.xlu2 %630 }
 0x600   :  { %v2067_v24 = vadd.f32 %v631_v46, %v623_v23 }
 0x602   :  { %1567 = vtanh.f32 %v2067_v24 }
 0x608   :  { %v1568_v25 = vpop.eup %1567 }
 0x609   :  { %636 = vrot.lane.b32.xlu1 %v1568_v25, %s1796_s19 }
 0x611   :  { %688 = vperm.xlu1 %1521, %v686_v26  }
 0x64a   :  { %v668_v28 = vpop.permute.xlu0 %667 }
 0x64b   :  { %v2080_v30 = vadd.f32 %v668_v28, %v660_v59 }
 0x64d   :  { %1569 = vtanh.f32 %v2080_v30 }
 0x652   :  { %v2084_v32 = vpop.permute.xlu0 %681 }
 0x653   :  { %v1570_v31 = vpop.eup %1569  ;;  %vm683_vm7 = vcmp.eq.s32.totalorder %v2084_v32, 1 }
 0x654   :  { %673 = vrot.lane.b32.xlu2 %v1570_v31, %s1796_s19 }
 0x67b   :  { %v637_v33 = vpop.permute.xlu1 %636 }
 0x67c   :  { %v2086_v36 = vmul.f32 %v637_v33, %v620_v47 }
 0x67e   :  { %v2093_v34 = vsel %vm683_vm7, %v2086_v36, %v2025_v41 }
 0x67f   :  { %712 = vrot.lane.b32.xlu2 %v2093_v34, %s1798_s1 }
 0x683   :  { %v2097_v0 = vpop.permute.xlu1 %688 }
 0x684   :  { %vm690_vm10 = vcmp.eq.s32.totalorder %v2097_v0, 1 }
 0x6ae   :  { %v674_v37 = vpop.permute.xlu2 %673 }
 0x6af   :  { %v2099_v39 = vmul.f32 %v674_v37, %v657_v17 }
 0x6b1   :  { %v2106_v44 = vsel %vm690_vm10, %v2099_v39, %v2038_v12  ;;  %v169_v12 = vpop.f32.mrf.mxu0 }
 0x6b2   :  { %738 = vrot.lane.b32.xlu0 %v2106_v44, %s1798_s1  ;;  %v170_v47 = vadd.f32 %v169_v12, %v1916_v27 }
 0x6d9   :  { %v713_v41 = vpop.permute.xlu2 %712 }
 0x6da   :  { %1486 = vmatmul.msk.f32.vlgmr.msrb.gmra.mxu2 %vm118_vm0, %v713_v41 }
 0x6db   :  { %1030 = vmatpush.msrb.mxu2 %v1857_v1 }
 0x6dd   :  { %1031 = vmatpush.msrb.mxu2 %v1860_v3 }
 0x6df   :  { %1032 = vmatpush.msrb.mxu2 %v1862_v6 }
 0x6e1   :  { %1033 = vmatpush.msrb.mxu2 %v1865_v10 }
 0x724   :  { %v739_v43 = vpop.permute.xlu0 %738 }
 0x725   :  { %1487 = vmatmul.msk.f32.vlgmr.msrb.gmra.mxu3 %vm118_vm0, %v739_v43 }
 0x726   :  { %1056 = vmatpush.msrb.mxu3 %v1876_v15 }
 0x728   :  { %1057 = vmatpush.msrb.mxu3 %v1878_v16 }
 0x72a   :  { %1058 = vmatpush.msrb.mxu3 %v1888_v18 }
 0x72c   :  { %1059 = vmatpush.msrb.mxu3 %v1890_v19 }
 0x75d   :  { %v733_v48 = vpop.f32.mrf.mxu2 }
 0x75e   :  { %v736_v51 = vadd.f32 %v733_v48, %v170_v47 }
 0x760   :  { %1571 = vtanh.f32 %v736_v51  ;;  %v1488_v60 = vmul.f32 -1.442695, %v736_v51 }
 0x766   :  { %v1572_v52 = vpop.eup %1571 }
 0x767   :  { %785 = vrot.lane.b32.xlu1 %v1572_v52, %s1796_s19 }
 0x7a8   :  { %v759_v57 = vpop.f32.mrf.mxu3 }
 0x7a9   :  { %v762_v58 = vadd.f32 %v759_v57, %v1928_v42 }
 0x7ab   :  { %1573 = vtanh.f32 %v762_v58  ;;  %v1489_v25 = vmul.f32 -1.442695, %v762_v58  ;;  %v839_v58 = vsel %vm837_vm6, 1, %v1797_v56 }
 0x7ac   :  { %1575 = vpow2.f32 %v1488_v60  ;;  %v2132_v60 = vsel %vm683_vm7, %v2067_v24, %v2064_v22  ;;  %v2145_v22 = vsel %vm690_vm10, %v2080_v30, %v2077_v54 }
 0x7b1   :  { %v1574_v61 = vpop.eup %1573 }
 0x7b2   :  { %822 = vrot.lane.b32.xlu2 %v1574_v61, %s1796_s19  ;;  %v1576_v62 = vpop.eup %1575 }
 0x7b3   :  { %v766_v63 = vadd.f32 1.0, %v1576_v62 }
 0x7b5   :  { %1577 = vrcp.f32 %v766_v63  ;;  %v778_v14 = vand.u32 2147483648, %v766_v63  ;;  %vm772_vm14 = vweird.f32 %v766_v63  ;;  %v776_v17 = vand.u32 2147483647, %v766_v63 }
 0x7b6   :  { %1579 = vpow2.f32 %v1489_v25 }
 0x7b7   :  { %v779_v20 = vor.u32 1.1754944e-38, %v778_v14  ;;  %vm777_vm1 = vcmp.eq.f32.partialorder %v776_v17, 8.507059e+37 }
 0x7bb   :  { %v1578_v2 = vpop.eup %1577 }
 0x7bc   :  { %v768_v5 = vmul.f32 %v1578_v2, %v766_v63  ;;  %vm773_vm13 = vweird.f32 %v1578_v2  ;;  %v1580_v26 = vpop.eup %1579 }
 0x7bd   :  { %vm774_vm15 = vmor %vm772_vm14, %vm773_vm13  ;;  %v803_v59 = vadd.f32 1.0, %v1580_v26  ;;  %vm838_vm13 = vcmp.gt.s32.totalorder %v1938_v55, 4 }
 0x7be   :  { %v769_v9 = vsub.f32 1.0, %v768_v5  ;;  %v846_v5 = vsel %vm838_vm13, 1, %v1797_v56 }
 0x7bf   :  { %1581 = vrcp.f32 %v803_v59  ;;  %v815_v43 = vand.u32 2147483648, %v803_v59  ;;  %vm809_vm3 = vweird.f32 %v803_v59  ;;  %v813_v12 = vand.u32 2147483647, %v803_v59 }
 0x7c0   :  { %v770_v49 = vmul.f32 %v1578_v2, %v769_v9 }
 0x7c1   :  { %v816_v48 = vor.u32 1.1754944e-38, %v815_v43  ;;  %vm814_vm5 = vcmp.eq.f32.partialorder %v813_v12, 8.507059e+37 }
 0x7c2   :  { %v771_v13 = vadd.f32 %v1578_v2, %v770_v49 }
 0x7c4   :  { %v775_v42 = vsel %vm774_vm15, %v1578_v2, %v771_v13 }
 0x7c5   :  { %v780_v23 = vsel %vm777_vm1, %v779_v20, %v775_v42  ;;  %v1582_v28 = vpop.eup %1581 }
 0x7c6   :  { %v805_v31 = vmul.f32 %v1582_v28, %v803_v59  ;;  %vm810_vm2 = vweird.f32 %v1582_v28  ;;  %v783_v61 = vmul.f32 %v780_v23, %v2132_v60 }
 0x7c7   :  { %vm811_vm4 = vmor %vm809_vm3, %vm810_vm2 }
 0x7c8   :  { %v806_v33 = vsub.f32 1.0, %v805_v31 }
 0x7ca   :  { %v807_v37 = vmul.f32 %v1582_v28, %v806_v33 }
 0x7cc   :  { %v808_v41 = vadd.f32 %v1582_v28, %v807_v37 }
 0x7ce   :  { %v812_v47 = vsel %vm811_vm4, %v1582_v28, %v808_v41 }
 0x7cf   :  { %v817_v52 = vsel %vm814_vm5, %v816_v48, %v812_v47 }
 0x7d0   :  { %v820_v24 = vmul.f32 %v817_v52, %v2145_v22 }
 0x7d9   :  { %v786_v21 = vpop.permute.xlu1 %785 }
 0x7da   :  { %v788_v46 = vmul.f32 %v786_v21, %v780_v23 }
 0x7dc   :  { %790 = vrot.lane.b32.xlu0 %v788_v46, %s1796_s19 }
 0x80c   :  { %v823_v51 = vpop.permute.xlu2 %822 }
 0x80d   :  { %v825_v57 = vmul.f32 %v823_v51, %v817_v52 }
 0x80f   :  { %827 = vrot.lane.b32.xlu1 %v825_v57, %s1796_s19 }
 0x817   :  { %841 = vperm.xlu1 %1521, %v839_v58  }
 0x84e   :  { %v791_v62 = vpop.permute.xlu0 %790 }
 0x84f   :  { %v2135_v63 = vadd.f32 %v791_v62, %v783_v61 }
 0x851   :  { %1583 = vtanh.f32 %v2135_v63 }
 0x857   :  { %v1584_v2 = vpop.eup %1583 }
 0x858   :  { %796 = vrot.lane.b32.xlu2 %v1584_v2, %s1796_s19 }
 0x860   :  { %848 = vperm.xlu2 %1522, %v846_v5  }
 0x881   :  { %v828_v9 = vpop.permute.xlu1 %827 }
 0x882   :  { %v2148_v49 = vadd.f32 %v828_v9, %v820_v24 }
 0x884   :  { %1585 = vtanh.f32 %v2148_v49 }
 0x889   :  { %v2152_v55 = vpop.permute.xlu1 %841 }
 0x88a   :  { %v1586_v13 = vpop.eup %1585  ;;  %vm843_vm14 = vcmp.eq.s32.totalorder %v2152_v55, 1 }
 0x88b   :  { %833 = vrot.lane.b32.xlu0 %v1586_v13, %s1796_s19 }
 0x8b2   :  { %v797_v56 = vpop.permute.xlu2 %796 }
 0x8b3   :  { %v2154_v14 = vmul.f32 %v797_v56, %v780_v23 }
 0x8b5   :  { %v2161_v54 = vsel %vm843_vm14, %v2154_v14, %v2093_v34 }
 0x8b6   :  { %870 = vrot.lane.b32.xlu0 %v2161_v54, %s1798_s1 }
 0x8ba   :  { %v2165_v30 = vpop.permute.xlu2 %848 }
 0x8bb   :  { %vm850_vm15 = vcmp.eq.s32.totalorder %v2165_v30, 1 }
 0x8fd   :  { %v834_v17 = vpop.permute.xlu0 %833 }
 0x8fe   :  { %v2167_v42 = vmul.f32 %v834_v17, %v817_v52 }
 0x900   :  { %v2174_v20 = vsel %vm850_vm15, %v2167_v42, %v2106_v44  ;;  %v172_v44 = vpop.f32.mrf.mxu0 }
 0x901   :  { %896 = vrot.lane.b32.xlu1 %v2174_v20, %s1798_s1 }
 0x928   :  { %v871_v34 = vpop.permute.xlu0 %870 }
 0x929   :  { %1490 = vmatmul.msk.f32.vlgmr.msra.gmra.mxu2 %vm118_vm0, %v871_v34 }
 0x92a   :  { %1174 = vmatpush.msra.mxu2 %v1857_v1  ;;  %v173_v1 = vadd.f32 %v172_v44, %v1916_v27 }
 0x92c   :  { %1175 = vmatpush.msra.mxu2 %v1860_v3 }
 0x92e   :  { %1176 = vmatpush.msra.mxu2 %v1862_v6 }
 0x930   :  { %1177 = vmatpush.msra.mxu2 %v1865_v10 }
 0x973   :  { %v897_v21 = vpop.permute.xlu1 %896 }
 0x974   :  { %1491 = vmatmul.msk.f32.vlgmr.msra.gmra.mxu3 %vm118_vm0, %v897_v21  ;;  %v2198_v21 = vsel %vm843_vm14, %v2135_v63, %v2132_v60 }
 0x975   :  { %1200 = vmatpush.msra.mxu3 %v1876_v15 }
 0x977   :  { %1201 = vmatpush.msra.mxu3 %v1878_v16 }
 0x979   :  { %1202 = vmatpush.msra.mxu3 %v1888_v18 }
 0x97b   :  { %1203 = vmatpush.msra.mxu3 %v1890_v19 }
 0x9ac   :  { %v891_v23 = vpop.f32.mrf.mxu2 }
 0x9ad   :  { %v894_v3 = vadd.f32 %v891_v23, %v173_v1 }
 0x9af   :  { %1587 = vtanh.f32 %v894_v3  ;;  %v1492_v10 = vmul.f32 -1.442695, %v894_v3 }
 0x9b1   :  { %1589 = vpow2.f32 %v1492_v10 }
 0x9b5   :  { %v1588_v6 = vpop.eup %1587 }
 0x9b6   :  { %943 = vrot.lane.b32.xlu2 %v1588_v6, %s1796_s19  ;;  %v2209_v6 = vsel %vm850_vm15, %v2148_v49, %v2145_v22 }
 0x9b7   :  { %v1590_v46 = vpop.eup %1589 }
 0x9b8   :  { %v924_v25 = vadd.f32 1.0, %v1590_v46 }
 0x9ba   :  { %1591 = vrcp.f32 %v924_v25  ;;  %v936_v33 = vand.u32 2147483648, %v924_v25  ;;  %vm930_vm2 = vweird.f32 %v924_v25  ;;  %v934_v37 = vand.u32 2147483647, %v924_v25 }
 0x9bc   :  { %v937_v43 = vor.u32 1.1754944e-38, %v936_v33  ;;  %vm935_vm4 = vcmp.eq.f32.partialorder %v934_v37, 8.507059e+37  ;;  %v1655_v33 = vld [vmem:[#allocation9 + $0x18] sm:$0xff]  ;;  %v1657_v37 = vld [vmem:[#allocation9 + $0x8] sm:$0xff] }
 0x9c0   :  { %v1592_v18 = vpop.eup %1591 }
 0x9c1   :  { %v926_v19 = vmul.f32 %v1592_v18, %v924_v25  ;;  %vm931_vm1 = vweird.f32 %v1592_v18 }
 0x9c2   :  { %vm932_vm3 = vmor %vm930_vm2, %vm931_vm1 }
 0x9c3   :  { %v927_v59 = vsub.f32 1.0, %v926_v19 }
 0x9c5   :  { %v928_v28 = vmul.f32 %v1592_v18, %v927_v59  ;;  %v1653_v59 = vld [vmem:[#allocation8 + $0x8] sm:$0xff] }
 0x9c7   :  { %v929_v31 = vadd.f32 %v1592_v18, %v928_v28  ;;  %v1654_v28 = vld [vmem:[#allocation8] sm:$0xff] }
 0x9c9   :  { %v933_v41 = vsel %vm932_vm3, %v1592_v18, %v929_v31 }
 0x9ca   :  { %v938_v47 = vsel %vm935_vm4, %v937_v43, %v933_v41  ;;  %v1658_v41 = vld [vmem:[#allocation9] sm:$0xff]  ;;  %v175_v43 = vpop.f32.mrf.mxu0 }
 0x9cb   :  { %v941_v44 = vmul.f32 %v938_v47, %v2198_v21 }
 0x9f7   :  { %v917_v15 = vpop.f32.mrf.mxu3 }
 0x9f8   :  { %v920_v16 = vadd.f32 %v917_v15, %v1926_v40 }
 0x9fa   :  { %1593 = vtanh.f32 %v920_v16  ;;  %v1493_v48 = vmul.f32 -1.442695, %v920_v16 }
 0x9fc   :  { %1595 = vpow2.f32 %v1493_v48 }
 0xa00   :  { %v1594_v26 = vpop.eup %1593 }
 0xa01   :  { %980 = vrot.lane.b32.xlu0 %v1594_v26, %s1796_s19  ;;  %v1652_v26 = vld [vmem:[#allocation8 + $0x10] sm:$0xff] }
 0xa02   :  { %v1596_v51 = vpop.eup %1595 }
 0xa03   :  { %v961_v52 = vadd.f32 1.0, %v1596_v51 }
 0xa05   :  { %1597 = vrcp.f32 %v961_v52  ;;  %v973_v5 = vand.u32 2147483648, %v961_v52  ;;  %vm967_vm6 = vweird.f32 %v961_v52  ;;  %v971_v24 = vand.u32 2147483647, %v961_v52 }
 0xa07   :  { %v974_v13 = vor.u32 1.1754944e-38, %v973_v5  ;;  %vm972_vm1 = vcmp.eq.f32.partialorder %v971_v24, 8.507059e+37 }
 0xa0b   :  { %v1598_v57 = vpop.eup %1597 }
 0xa0c   :  { %v963_v58 = vmul.f32 %v1598_v57, %v961_v52  ;;  %vm968_vm5 = vweird.f32 %v1598_v57 }
 0xa0d   :  { %vm969_vm13 = vmor %vm967_vm6, %vm968_vm5 }
 0xa0e   :  { %v964_v61 = vsub.f32 1.0, %v963_v58 }
 0xa10   :  { %v944_v12 = vpop.permute.xlu2 %943  ;;  %v965_v62 = vmul.f32 %v1598_v57, %v964_v61 }
 0xa11   :  { %v946_v40 = vmul.f32 %v944_v12, %v938_v47  ;;  %v176_v12 = vadd.f32 %v175_v43, %v1916_v27 }
 0xa12   :  { %v966_v2 = vadd.f32 %v1598_v57, %v965_v62 }
 0xa13   :  { %948 = vrot.lane.b32.xlu1 %v946_v40, %s1796_s19 }
 0xa14   :  { %v970_v9 = vsel %vm969_vm13, %v1598_v57, %v966_v2 }
 0xa15   :  { %v975_v56 = vsel %vm972_vm1, %v974_v13, %v970_v9 }
 0xa16   :  { %v978_v10 = vmul.f32 %v975_v56, %v2209_v6 }
 0xa73   :  { %v981_v17 = vpop.permute.xlu0 %980 }
 0xa74   :  { %v983_v34 = vmul.f32 %v981_v17, %v975_v56 }
 0xa76   :  { %985 = vrot.lane.b32.xlu2 %v983_v34, %s1796_s19 }
 0xa85   :  { %v949_v1 = vpop.permute.xlu1 %948 }
 0xa86   :  { %v2201_v23 = vadd.f32 %v949_v1, %v941_v44 }
 0xa88   :  { %1599 = vtanh.f32 %v2201_v23  ;;  %v2248_v43 = vsel %vm850_vm15, %v2201_v23, %v2198_v21 }
 0xa8e   :  { %v1600_v3 = vpop.eup %1599 }
 0xa8f   :  { %954 = vrot.lane.b32.xlu0 %v1600_v3, %s1796_s19 }
 0xad0   :  { %v986_v60 = vpop.permute.xlu2 %985 }
 0xad1   :  { %v2212_v63 = vadd.f32 %v986_v60, %v978_v10 }
 0xad3   :  { %1601 = vtanh.f32 %v2212_v63 }
 0xad9   :  { %v1602_v46 = vpop.eup %1601 }
 0xada   :  { %991 = vrot.lane.b32.xlu1 %v1602_v46, %s1796_s19 }
 0xb01   :  { %v955_v25 = vpop.permute.xlu0 %954 }
 0xb02   :  { %v2216_v15 = vmul.f32 %v955_v25, %v938_v47 }
 0xb04   :  { %v2222_v16 = vsel %vm850_vm15, %v2216_v15, %v2161_v54  ;;  %v1651_v54 = vld [vmem:[#allocation8 + $0x18] sm:$0xff] }
 0xb05   :  { %1014 = vrot.lane.b32.xlu2 %v2222_v16, %s1798_s1 }
 0xb4c   :  { %v992_v22 = vpop.permute.xlu1 %991 }
 0xb4d   :  { %v2226_v49 = vmul.f32 %v992_v22, %v975_v56 }
 0xb4f   :  { %v2232_v18 = vsel %vm843_vm14, %v2226_v49, %v2174_v20  ;;  %v1656_v20 = vld [vmem:[#allocation9 + $0x10] sm:$0xff] }
 0xb50   :  { %1040 = vrot.lane.b32.xlu0 %v2232_v18, %s1798_s1 }
 0xb5f   :  { %v1015_v19 = vpop.permute.xlu2 %1014 }
 0xb60   :  { %1494 = vmatmul.msk.f32.vlgmr.msrb.gmra.mxu2 %vm118_vm0, %v1015_v19 }
 0xb61   :  { %1318 = vmatpush.msrb.mxu2 %v1651_v54 }
 0xb63   :  { %1319 = vmatpush.msrb.mxu2 %v1652_v26 }
 0xb65   :  { %1320 = vmatpush.msrb.mxu2 %v1653_v59 }
 0xb67   :  { %1321 = vmatpush.msrb.mxu2 %v1654_v28 }
 0xbc2   :  { %v1041_v31 = vpop.permute.xlu0 %1040 }
 0xbc3   :  { %1495 = vmatmul.msk.f32.vlgmr.msrb.gmra.mxu3 %vm118_vm0, %v1041_v31 }
 0xbc4   :  { %1344 = vmatpush.msrb.mxu3 %v1655_v33 }
 0xbc6   :  { %1345 = vmatpush.msrb.mxu3 %v1656_v20 }
 0xbc8   :  { %1346 = vmatpush.msrb.mxu3 %v1657_v37 }
 0xbca   :  { %1347 = vmatpush.msrb.mxu3 %v1658_v41 }
 0xbe3   :  { %v1035_v47 = vpop.f32.mrf.mxu2 }
 0xbe4   :  { %v1038_v40 = vadd.f32 %v1035_v47, %v176_v12 }
 0xbe6   :  { %1603 = vtanh.f32 %v1038_v40  ;;  %v1496_v51 = vmul.f32 -1.442695, %v1038_v40 }
 0xbe8   :  { %1605 = vpow2.f32 %v1496_v51  ;;  %v2259_v51 = vsel %vm843_vm14, %v2212_v63, %v2209_v6 }
 0xbec   :  { %v1604_v48 = vpop.eup %1603 }
 0xbed   :  { %1087 = vrot.lane.b32.xlu1 %v1604_v48, %s1796_s19 }
 0xbee   :  { %v1606_v52 = vpop.eup %1605 }
 0xbef   :  { %v1068_v57 = vadd.f32 1.0, %v1606_v52 }
 0xbf1   :  { %1607 = vrcp.f32 %v1068_v57  ;;  %v1080_v56 = vand.u32 2147483648, %v1068_v57  ;;  %vm1074_vm3 = vweird.f32 %v1068_v57  ;;  %v1078_v17 = vand.u32 2147483647, %v1068_v57 }
 0xbf3   :  { %v1081_v44 = vor.u32 1.1754944e-38, %v1080_v56  ;;  %vm1079_vm5 = vcmp.eq.f32.partialorder %v1078_v17, 8.507059e+37 }
 0xbf7   :  { %v1608_v62 = vpop.eup %1607 }
 0xbf8   :  { %v1070_v2 = vmul.f32 %v1608_v62, %v1068_v57  ;;  %vm1075_vm2 = vweird.f32 %v1608_v62 }
 0xbf9   :  { %vm1076_vm4 = vmor %vm1074_vm3, %vm1075_vm2 }
 0xbfa   :  { %v1071_v24 = vsub.f32 1.0, %v1070_v2 }
 0xbfc   :  { %v1072_v9 = vmul.f32 %v1608_v62, %v1071_v24  ;;  %v178_v24 = vpop.f32.mrf.mxu0 }
 0xbfe   :  { %v1073_v13 = vadd.f32 %v1608_v62, %v1072_v9  ;;  %v179_v9 = vadd.f32 %v178_v24, %v1916_v27 }
 0xc00   :  { %v1077_v34 = vsel %vm1076_vm4, %v1608_v62, %v1073_v13 }
 0xc01   :  { %v1082_v3 = vsel %vm1079_vm5, %v1081_v44, %v1077_v34 }
 0xc02   :  { %v1085_v12 = vmul.f32 %v1082_v3, %v2248_v43 }
 0xc46   :  { %v1061_v58 = vpop.f32.mrf.mxu3 }
 0xc47   :  { %v1064_v61 = vadd.f32 %v1061_v58, %v1924_v38 }
 0xc49   :  { %1609 = vtanh.f32 %v1064_v61  ;;  %v1497_v10 = vmul.f32 -1.442695, %v1064_v61 }
 0xc4b   :  { %1611 = vpow2.f32 %v1497_v10 }
 0xc4f   :  { %v1610_v5 = vpop.eup %1609 }
 0xc50   :  { %1124 = vrot.lane.b32.xlu2 %v1610_v5, %s1796_s19 }
 0xc51   :  { %v1612_v60 = vpop.eup %1611 }
 0xc52   :  { %v1105_v46 = vadd.f32 1.0, %v1612_v60 }
 0xc54   :  { %1613 = vrcp.f32 %v1105_v46  ;;  %v1117_v59 = vand.u32 2147483648, %v1105_v46  ;;  %vm1111_vm13 = vweird.f32 %v1105_v46  ;;  %v1115_v28 = vand.u32 2147483647, %v1105_v46 }
 0xc56   :  { %v1118_v33 = vor.u32 1.1754944e-38, %v1117_v59  ;;  %vm1116_vm2 = vcmp.eq.f32.partialorder %v1115_v28, 8.507059e+37 }
 0xc5a   :  { %v1614_v25 = vpop.eup %1613 }
 0xc5b   :  { %v1107_v22 = vmul.f32 %v1614_v25, %v1105_v46  ;;  %vm1112_vm6 = vweird.f32 %v1614_v25 }
 0xc5c   :  { %vm1113_vm1 = vmor %vm1111_vm13, %vm1112_vm6 }
 0xc5d   :  { %v1108_v19 = vsub.f32 1.0, %v1107_v22 }
 0xc5f   :  { %v1088_v1 = vpop.permute.xlu1 %1087  ;;  %v1109_v54 = vmul.f32 %v1614_v25, %v1108_v19 }
 0xc60   :  { %v1090_v38 = vmul.f32 %v1088_v1, %v1082_v3 }
 0xc61   :  { %v1110_v26 = vadd.f32 %v1614_v25, %v1109_v54 }
 0xc62   :  { %1092 = vrot.lane.b32.xlu0 %v1090_v38, %s1796_s19 }
 0xc63   :  { %v1114_v31 = vsel %vm1113_vm1, %v1614_v25, %v1110_v26 }
 0xc64   :  { %v1119_v37 = vsel %vm1116_vm2, %v1118_v33, %v1114_v31 }
 0xc65   :  { %v1122_v52 = vmul.f32 %v1119_v37, %v2259_v51 }
 0xcaa   :  { %v1125_v20 = vpop.permute.xlu2 %1124 }
 0xcab   :  { %v1127_v41 = vmul.f32 %v1125_v20, %v1119_v37 }
 0xcad   :  { %1129 = vrot.lane.b32.xlu1 %v1127_v41, %s1796_s19 }
 0xcd4   :  { %v1093_v47 = vpop.permute.xlu0 %1092 }
 0xcd5   :  { %v2251_v40 = vadd.f32 %v1093_v47, %v1085_v12 }
 0xcd7   :  { %1615 = vtanh.f32 %v2251_v40 }
 0xcdd   :  { %v1616_v48 = vpop.eup %1615 }
 0xcde   :  { %1098 = vrot.lane.b32.xlu2 %v1616_v48, %s1796_s19 }
 0xd1f   :  { %v1130_v21 = vpop.permute.xlu1 %1129 }
 0xd20   :  { %v2262_v23 = vadd.f32 %v1130_v21, %v1122_v52 }
 0xd22   :  { %1617 = vtanh.f32 %v2262_v23 }
 0xd28   :  { %v1618_v57 = vpop.eup %1617 }
 0xd29   :  { %1135 = vrot.lane.b32.xlu0 %v1618_v57, %s1796_s19 }
 0xd38   :  { %v1099_v58 = vpop.permute.xlu2 %1098 }
 0xd39   :  { %v2266_v61 = vmul.f32 %v1099_v58, %v1082_v3 }
 0xd3b   :  { %v2272_v62 = vsel %vm690_vm10, %v2266_v61, %v2222_v16 }
 0xd3c   :  { %1158 = vrot.lane.b32.xlu1 %v2272_v62, %s1798_s1 }
 0xd9b   :  { %v1136_v6 = vpop.permute.xlu0 %1135 }
 0xd9c   :  { %v2276_v63 = vmul.f32 %v1136_v6, %v1119_v37 }
 0xd9e   :  { %v2282_v2 = vsel %vm683_vm7, %v2276_v63, %v2232_v18 }
 0xd9f   :  { %1184 = vrot.lane.b32.xlu2 %v2282_v2, %s1798_s1 }
 0xdae   :  { %v1159_v5 = vpop.permute.xlu1 %1158 }
 0xdaf   :  { %1498 = vmatmul.msk.f32.vlgmr.msra.gmra.mxu2 %vm118_vm0, %v1159_v5 }
 0xdf9   :  { %v1185_v16 = vpop.permute.xlu2 %1184 }
 0xdfa   :  { %1499 = vmatmul.msk.f32.vlgmr.msra.gmra.mxu3 %vm118_vm0, %v1185_v16 }
 0xe32   :  { %v1179_v13 = vpop.f32.mrf.mxu2 }
 0xe33   :  { %v1182_v56 = vadd.f32 %v1179_v13, %v179_v9  ;;  %v2298_v9 = vsel %vm690_vm10, %v2251_v40, %v2248_v43 }
 0xe35   :  { %1619 = vtanh.f32 %v1182_v56  ;;  %v1500_v44 = vmul.f32 -1.442695, %v1182_v56 }
 0xe3b   :  { %v1620_v17 = vpop.eup %1619 }
 0xe3c   :  { %1231 = vrot.lane.b32.xlu0 %v1620_v17, %s1796_s19 }
 0xe7d   :  { %v1205_v18 = vpop.f32.mrf.mxu3 }
 0xe7e   :  { %v1208_v34 = vadd.f32 %v1205_v18, %v1921_v35 }
 0xe80   :  { %1621 = vtanh.f32 %v1208_v34  ;;  %v1501_v33 = vmul.f32 -1.442695, %v1208_v34  ;;  %v2309_v34 = vsel %vm683_vm7, %v2262_v23, %v2259_v51 }
 0xe81   :  { %1623 = vpow2.f32 %v1500_v44 }
 0xe86   :  { %v1622_v1 = vpop.eup %1621 }
 0xe87   :  { %1268 = vrot.lane.b32.xlu1 %v1622_v1, %s1796_s19  ;;  %v1624_v3 = vpop.eup %1623 }
 0xe88   :  { %v1212_v38 = vadd.f32 1.0, %v1624_v3 }
 0xe8a   :  { %1625 = vrcp.f32 %v1212_v38  ;;  %v1224_v19 = vand.u32 2147483648, %v1212_v38  ;;  %vm1218_vm4 = vweird.f32 %v1212_v38  ;;  %v1222_v54 = vand.u32 2147483647, %v1212_v38 }
 0xe8b   :  { %1627 = vpow2.f32 %v1501_v33 }
 0xe8c   :  { %v1225_v26 = vor.u32 1.1754944e-38, %v1224_v19  ;;  %vm1223_vm6 = vcmp.eq.f32.partialorder %v1222_v54, 8.507059e+37 }
 0xe90   :  { %v1626_v10 = vpop.eup %1625 }
 0xe91   :  { %v1214_v60 = vmul.f32 %v1626_v10, %v1212_v38  ;;  %vm1219_vm3 = vweird.f32 %v1626_v10  ;;  %v1628_v20 = vpop.eup %1627 }
 0xe92   :  { %vm1220_vm5 = vmor %vm1218_vm4, %vm1219_vm3  ;;  %v1249_v37 = vadd.f32 1.0, %v1628_v20 }
 0xe93   :  { %v1215_v46 = vsub.f32 1.0, %v1214_v60 }
 0xe94   :  { %1629 = vrcp.f32 %v1249_v37  ;;  %v1261_v21 = vand.u32 2147483648, %v1249_v37  ;;  %vm1255_vm1 = vweird.f32 %v1249_v37  ;;  %v1259_v57 = vand.u32 2147483647, %v1249_v37 }
 0xe95   :  { %v1216_v25 = vmul.f32 %v1626_v10, %v1215_v46 }
 0xe96   :  { %v1262_v6 = vor.u32 1.1754944e-38, %v1261_v21  ;;  %vm1260_vm3 = vcmp.eq.f32.partialorder %v1259_v57, 8.507059e+37 }
 0xe97   :  { %v1217_v22 = vadd.f32 %v1626_v10, %v1216_v25 }
 0xe99   :  { %v1221_v35 = vsel %vm1220_vm5, %v1626_v10, %v1217_v22  ;;  %v181_v22 = vpop.f32.mrf.mxu0 }
 0xe9a   :  { %v1226_v59 = vsel %vm1223_vm6, %v1225_v26, %v1221_v35  ;;  %v1630_v41 = vpop.eup %1629 }
 0xe9b   :  { %v1251_v12 = vmul.f32 %v1630_v41, %v1249_v37  ;;  %vm1256_vm13 = vweird.f32 %v1630_v41  ;;  %v1229_v13 = vmul.f32 %v1226_v59, %v2298_v9 }
 0xe9c   :  { %vm1257_vm2 = vmor %vm1255_vm1, %vm1256_vm13 }
 0xe9d   :  { %v1252_v47 = vsub.f32 1.0, %v1251_v12 }
 0xe9f   :  { %v1253_v48 = vmul.f32 %v1630_v41, %v1252_v47 }
 0xea1   :  { %v1254_v52 = vadd.f32 %v1630_v41, %v1253_v48 }
 0xea3   :  { %v1258_v58 = vsel %vm1257_vm2, %v1630_v41, %v1254_v52 }
 0xea4   :  { %v1263_v16 = vsel %vm1260_vm3, %v1262_v6, %v1258_v58 }
 0xea5   :  { %v1266_v44 = vmul.f32 %v1263_v16, %v2309_v34 }
 0xeae   :  { %v1232_v28 = vpop.permute.xlu0 %1231 }
 0xeaf   :  { %v1234_v31 = vmul.f32 %v1232_v28, %v1226_v59 }
 0xeb1   :  { %1236 = vrot.lane.b32.xlu2 %v1234_v31, %s1796_s19 }
 0xef9   :  { %v1269_v5 = vpop.permute.xlu1 %1268 }
 0xefa   :  { %v1271_v24 = vmul.f32 %v1269_v5, %v1263_v16 }
 0xefc   :  { %1273 = vrot.lane.b32.xlu0 %v1271_v24, %s1796_s19 }
 0xf0b   :  { %v1237_v56 = vpop.permute.xlu2 %1236 }
 0xf0c   :  { %v2301_v17 = vadd.f32 %v1237_v56, %v1229_v13 }
 0xf0e   :  { %1631 = vtanh.f32 %v2301_v17 }
 0xf14   :  { %v1632_v18 = vpop.eup %1631 }
 0xf15   :  { %1242 = vrot.lane.b32.xlu1 %v1632_v18, %s1796_s19 }
 0xf6e   :  { %v1274_v43 = vpop.permute.xlu0 %1273 }
 0xf6f   :  { %v2312_v40 = vadd.f32 %v1274_v43, %v1266_v44 }
 0xf71   :  { %1633 = vtanh.f32 %v2312_v40  ;;  %v1286_v0 = vsel %vm523_vm8, %v2312_v40, %v2309_v34  ;;  %v853_v34 = vsel %vm843_vm14, %v2154_v14, 0.0  ;;  %v1005_v40 = vsel %vm843_vm14, %v2226_v49, 0.0 }
 0xf77   :  { %v1634_v1 = vpop.eup %1633 }
 0xf78   :  { %1279 = vrot.lane.b32.xlu2 %v1634_v1, %s1796_s19 }
 0xf87   :  { %v1243_v3 = vpop.permute.xlu1 %1242 }
 0xf88   :  { %v2316_v38 = vmul.f32 %v1243_v3, %v1226_v59 }
 0xf8a   :  { %v1283_v10 = vsel %vm530_vm9, %v2316_v38, %v2272_v62  ;;  %v182_v62 = vadd.f32 %v181_v22, %v1916_v27  ;;  %v1287_v11 = vsel %vm530_vm9, %v2316_v38, 0.0 }
 0xf8b   :  { %1302 = vrot.lane.b32.xlu0 %v1283_v10, %s1798_s1 }
 0xfd2   :  { %v1280_v51 = vpop.permute.xlu2 %1279 }
 0xfd3   :  { %v2323_v23 = vmul.f32 %v1280_v51, %v1263_v16 }
 0xfd5   :  { %v1285_v60 = vsel %vm523_vm8, %v2323_v23, %v2282_v2 }
 0xfd6   :  { %1328 = vrot.lane.b32.xlu1 %v1285_v60, %s1798_s1 }
 0xffd   :  { %v1303_v46 = vpop.permute.xlu0 %1302 }
 0xffe   :  { %1502 = vmatmul.msk.f32.vlgmr.msrb.gmra.mxu2 %vm118_vm0, %v1303_v46 }
0x1048   :  { %v1329_v25 = vpop.permute.xlu1 %1328 }
0x1049   :  { %1503 = vmatmul.msk.f32.vlgmr.msrb.gmra.mxu3 %vm118_vm0, %v1329_v25  ;;  %v1284_v25 = vsel %vm530_vm9, %v2301_v17, %v2298_v9  ;;  %v533_v9 = vsel %vm523_vm8, %v2018_v7, 0.0  ;;  %v1293_v17 = vsel %vm523_vm8, %v2323_v23, 0.0  ;;  %v999_v7 = vsel %vm850_vm15, %v2216_v15, 0.0 }
0x1081   :  { %v1323_v19 = vpop.f32.mrf.mxu2 }
0x1082   :  { %v1326_v54 = vadd.f32 %v1323_v19, %v182_v62 }
0x1084   :  { %1635 = vtanh.f32 %v1326_v54  ;;  %v1504_v26 = vmul.f32 -1.442695, %v1326_v54  ;;  %v693_v54 = vsel %vm683_vm7, %v2086_v36, 0.0  ;;  %v1143_v36 = vsel %vm690_vm10, %v2266_v61, 0.0 }
0x1085   :  { %v1149_v61 = vsel %vm683_vm7, %v2276_v63, 0.0 }
0x1086   :  { %1637 = vpow2.f32 %v1504_v26 }
0x108a   :  { %v1636_v35 = vpop.eup %1635 }
0x108b   :  { %1375 = vrot.lane.b32.xlu2 %v1636_v35, %s1796_s19 }
0x108c   :  { %v1638_v2 = vpop.eup %1637 }
0x108d   :  { %v1356_v59 = vadd.f32 1.0, %v1638_v2 }
0x108f   :  { %1639 = vrcp.f32 %v1356_v59  ;;  %v1368_v47 = vand.u32 2147483648, %v1356_v59  ;;  %vm1362_vm5 = vweird.f32 %v1356_v59  ;;  %v1366_v48 = vand.u32 2147483647, %v1356_v59 }
0x1091   :  { %v1369_v21 = vor.u32 1.1754944e-38, %v1368_v47  ;;  %vm1367_vm13 = vcmp.eq.f32.partialorder %v1366_v48, 8.507059e+37 }
0x1095   :  { %v1640_v33 = vpop.eup %1639 }
0x1096   :  { %v1358_v20 = vmul.f32 %v1640_v33, %v1356_v59  ;;  %vm1363_vm4 = vweird.f32 %v1640_v33 }
0x1097   :  { %vm1364_vm6 = vmor %vm1362_vm5, %vm1363_vm4 }
0x1098   :  { %v1359_v41 = vsub.f32 1.0, %v1358_v20 }
0x109a   :  { %v1360_v27 = vmul.f32 %v1640_v33, %v1359_v41 }
0x109c   :  { %v1361_v12 = vadd.f32 %v1640_v33, %v1360_v27 }
0x109e   :  { %v1365_v52 = vsel %vm1364_vm6, %v1640_v33, %v1361_v12 }
0x109f   :  { %v2336_v58 = vsel %vm1367_vm13, %v1369_v21, %v1365_v52 }
0x10a0   :  { %v1373_v22 = vmul.f32 %v2336_v58, %v1284_v25 }
0x10cc   :  { %v1349_v28 = vpop.f32.mrf.mxu3 }
0x10cd   :  { %v1352_v31 = vadd.f32 %v1349_v28, %v1918_v29 }
0x10cf   :  { %1641 = vtanh.f32 %v1352_v31  ;;  %v1505_v6 = vmul.f32 -1.442695, %v1352_v31 }
0x10d1   :  { %1643 = vpow2.f32 %v1505_v6 }
0x10d5   :  { %v1642_v37 = vpop.eup %1641 }
0x10d6   :  { %1412 = vrot.lane.b32.xlu0 %v1642_v37, %s1796_s19 }
0x10d7   :  { %v1644_v5 = vpop.eup %1643 }
0x10d8   :  { %v1393_v16 = vadd.f32 1.0, %v1644_v5 }
0x10da   :  { %1645 = vrcp.f32 %v1393_v16  ;;  %v1405_v43 = vand.u32 2147483648, %v1393_v16  ;;  %vm1399_vm2 = vweird.f32 %v1393_v16  ;;  %v1403_v1 = vand.u32 2147483647, %v1393_v16 }
0x10dc   :  { %v1406_v10 = vor.u32 1.1754944e-38, %v1405_v43  ;;  %vm1404_vm4 = vcmp.eq.f32.partialorder %v1403_v1, 8.507059e+37 }
0x10e0   :  { %v1646_v24 = vpop.eup %1645 }
0x10e1   :  { %v1395_v13 = vmul.f32 %v1646_v24, %v1393_v16  ;;  %vm1400_vm1 = vweird.f32 %v1646_v24 }
0x10e2   :  { %vm1401_vm3 = vmor %vm1399_vm2, %vm1400_vm1 }
0x10e3   :  { %v1396_v56 = vsub.f32 1.0, %v1395_v13 }
0x10e5   :  { %v1376_v57 = vpop.permute.xlu2 %1375  ;;  %v1397_v18 = vmul.f32 %v1646_v24, %v1396_v56 }
0x10e6   :  { %v1378_v29 = vmul.f32 %v1376_v57, %v2336_v58 }
0x10e7   :  { %v1398_v44 = vadd.f32 %v1646_v24, %v1397_v18 }
0x10e8   :  { %1380 = vrot.lane.b32.xlu1 %v1378_v29, %s1796_s19 }
0x10e9   :  { %v1402_v3 = vsel %vm1401_vm3, %v1646_v24, %v1398_v44 }
0x10ea   :  { %v2340_v51 = vsel %vm1404_vm4, %v1406_v10, %v1402_v3 }
0x1148   :  { %v1413_v60 = vpop.permute.xlu0 %1412 }
0x1149   :  { %v1415_v46 = vmul.f32 %v1413_v60, %v2340_v51 }
0x114b   :  { %1417 = vrot.lane.b32.xlu2 %v1415_v46, %s1796_s19 }
0x1153   :  { %385 = vrot.lane.b32.xlu2 %v1971_v53, %s1799_s21  ;;  %v860_v53 = vsel %vm850_vm15, %v2167_v42, 0.0  ;;  %v700_v42 = vsel %vm690_vm10, %v2099_v39, 0.0  ;;  %v1410_v39 = vmul.f32 %v2340_v51, %v1286_v0  ;;  %vm389_vm10 = vcmask 523520  }
0x115a   :  { %v1381_v62 = vpop.permute.xlu1 %1380 }
0x115b   :  { %v1383_v19 = vadd.f32 %v1381_v62, %v1373_v22  ;;  %695 = vrot.lane.b32.xlu2 %v693_v54, %s1798_s1 }
0x115d   :  { %1647 = vtanh.f32 %v1383_v19 }
0x1163   :  { %v1648_v35 = vpop.eup %1647  ;;  %862 = vrot.lane.b32.xlu2 %v860_v53, %s1799_s21 }
0x1164   :  { %1386 = vrot.lane.b32.xlu0 %v1648_v35, %s1796_s19 }
0x116b   :  { %1145 = vrot.lane.b32.xlu2 %v1143_v36, %s1798_s1 }
0x116c   :  { %535 = vrot.lane.b32.xlu0 %v533_v9, %s1798_s1 }
0x1173   :  { %1295 = vrot.lane.b32.xlu2 %v1293_v17, %s1799_s21 }
0x1174   :  { %702 = vrot.lane.b32.xlu0 %v700_v42, %s1799_s21 }
0x117c   :  { %1001 = vrot.lane.b32.xlu0 %v999_v7, %s1798_s1 }
0x1184   :  { %1151 = vrot.lane.b32.xlu0 %v1149_v61, %s1799_s21 }
0x11a5   :  { %v1418_v23 = vpop.permute.xlu2 %1417 }
0x11a6   :  { %v1420_v26 = vadd.f32 %v1418_v23, %v1410_v39 }
0x11a8   :  { %1649 = vtanh.f32 %v1420_v26 }
0x11ad   :  { %v386_v30 = vpop.permute.xlu2 %385 }
0x11ae   :  { %v1650_v15 = vpop.eup %1649  ;;  %390 = vst.msk [vmem:[#allocation11 + $0x38] sm:$0xff] %vm389_vm10, %v386_v30 }
0x11af   :  { %1423 = vrot.lane.b32.xlu1 %v1650_v15, %s1796_s19 }
0x11b5   :  { %v696_v32 = vpop.permute.xlu2 %695 }
0x11b6   :  { %699 = vst.msk [vmem:[#allocation11 + $0x10] sm:$0xff] %vm118_vm0, %v696_v32 }
0x11b7   :  { %542 = vrot.lane.b32.xlu1 %v540_v4, %s1799_s21 }
0x11bd   :  { %v863_v63 = vpop.permute.xlu2 %862 }
0x11be   :  { %866 = vst.msk [vmem:[#allocation11 + $0x20] sm:$0xff] %vm389_vm10, %v863_v63 }
0x11bf   :  { %855 = vrot.lane.b32.xlu1 %v853_v34, %s1798_s1 }
0x11c5   :  { %v1146_v2 = vpop.permute.xlu2 %1145 }
0x11c7   :  { %1007 = vrot.lane.b32.xlu1 %v1005_v40, %s1799_s21 }
0x11cd   :  { %v1296_v55 = vpop.permute.xlu2 %1295 }
0x11cf   :  { %1289 = vrot.lane.b32.xlu1 %v1287_v11, %s1798_s1 }
0x11d6   :  { %v1387_v59 = vpop.permute.xlu0 %1386 }
0x11d7   :  { %v1389_v28 = vmul.f32 %v1387_v59, %v2336_v58 }
0x11d9   :  { %v1427_v14 = vsel %vm376_vm12, %v1389_v28, 0.0 }
0x11da   :  { %1429 = vrot.lane.b32.xlu0 %v1427_v14, %s1798_s1 }
0x11de   :  { %v536_v31 = vpop.permute.xlu0 %535 }
0x11df   :  { %539 = vst.msk [vmem:[#allocation11 + $0x8] sm:$0xff] %vm118_vm0, %v536_v31 }
0x11e0   :  { %1298 = vst.msk [vmem:[#allocation11 + $0x8] sm:$0xff] %vm389_vm10, %v1296_v55 }
0x11e6   :  { %v703_v49 = vpop.permute.xlu0 %702 }
0x11e7   :  { %706 = vst.msk [vmem:[#allocation11 + $0x28] sm:$0xff] %vm389_vm10, %v703_v49 }
0x11e8   :  { %1148 = vst.msk [vmem:[#allocation11 + $0x28] sm:$0xff] %vm118_vm0, %v1146_v2 }
0x11ee   :  { %v1002_v8 = vpop.permute.xlu0 %1001 }
0x11ef   :  { %1004 = vst.msk [vmem:[#allocation11 + $0x20] sm:$0xff] %vm118_vm0, %v1002_v8 }
0x11f6   :  { %v1152_v38 = vpop.permute.xlu0 %1151 }
0x11f7   :  { %1154 = vst.msk [vmem:[#allocation11 + $0x10] sm:$0xff] %vm389_vm10, %v1152_v38 }
0x1221   :  { %v1424_v50 = vpop.permute.xlu1 %1423 }
0x1222   :  { %v1426_v33 = vmul.f32 %v1424_v50, %v2340_v51 }
0x1224   :  { %v1433_v20 = vsel %vm369_vm11, %v1426_v33, 0.0 }
0x1225   :  { %1435 = vrot.lane.b32.xlu1 %v1433_v20, %s1799_s21 }
0x1229   :  { %v543_v37 = vpop.permute.xlu1 %542 }
0x122a   :  { %546 = vst.msk [vmem:[#allocation11 + $0x30] sm:$0xff] %vm389_vm10, %v543_v37 }
0x1231   :  { %v856_v41 = vpop.permute.xlu1 %855 }
0x1232   :  { %859 = vst.msk [vmem:[#allocation11 + $0x18] sm:$0xff] %vm118_vm0, %v856_v41 }
0x1239   :  { %v1008_v27 = vpop.permute.xlu1 %1007 }
0x123a   :  { %1010 = vst.msk [vmem:[#allocation11 + $0x18] sm:$0xff] %vm389_vm10, %v1008_v27 }
0x1241   :  { %v1290_v12 = vpop.permute.xlu1 %1289 }
0x1242   :  { %1292 = vst.msk [vmem:[#allocation11 + $0x30] sm:$0xff] %vm118_vm0, %v1290_v12 }
0x124c   :  { %v1430_v47 = vpop.permute.xlu0 %1429 }
0x124d   :  { %1432 = vst.msk [vmem:[#allocation11 + $0x38] sm:$0xff] %vm118_vm0, %v1430_v47 }
0x1297   :  { %v1436_v45 = vpop.permute.xlu1 %1435 }
0x1298   :  { %1438 = vst.msk [vmem:[#allocation11] sm:$0xff] %vm389_vm10, %v1436_v45 }
0x1299   :  { %1451 = dma.vmem_to_hbm [thread:$0]  %s1444_s23, 1024, %s1446_s26, [#allocation5], %s1791_s9, %s1791_s9, %s1792_s10  }
0x129a   :  { %1785 = dma.done.wait [#allocation5], 1024  }
0x129b   :  { %1786 = vsyncadd [#allocation5], 4294966272 }
0x129c   :  { %1456 = vsyncpa [#allocation4], 1 }
0x129d   :  { %1457 = vsyncpa [#allocation7], 1 }
0x129e   :  { %1458 = vsyncpa [#allocation10], 1 }
0x129f   :  { %1459 = vsyncpa [#allocation5], 1 }

</bundles_post_ra>
